<compile_context>
chip_gen: v7x
topology: tpu7x:2x2x1
jax: 0.10.0
libtpu: 0.0.40
codegen_flags: <defaults>
</compile_context>

<pallas_src>
import functools

import numpy as np
import jax
import jax.numpy as jnp
from jax.experimental import pallas as pl
from jax.experimental.pallas import tpu as pltpu

C_DIM = 32
N_POINTS = 16
_PTS_DIM = 3 * N_POINTS      # 48
_PACK = 128                  # packed output lane width (points | latent | zero pad)
_EPS = 1e-12                 # F.normalize default eps


# --------------------------------------------------------------------------- #
# Host-side constants (trace-time, cached).                                    #
# --------------------------------------------------------------------------- #
def _out_hw(h, w):
    return (h + 2 - 3) // 2 + 1, (w + 2 - 3) // 2 + 1


@functools.lru_cache(maxsize=None)
def _conv_selectors(h, w):
    """Batch-independent 0/1 gather matrices for a 3x3 / stride-2 / pad-1 conv.

    s[t] @ act (act: (h*w, cin), spatial-major rows) gathers, for tap t=ki*3+kj, the
    input row feeding every output pixel; all-zero rows implement the zero padding.
    Shape (9, oh*ow, h*w) — tiny (only used for the 8x8 and 4x4 feature maps).
    """
    oh, ow = _out_hw(h, w)
    s = np.zeros((9, oh * ow, h * w), np.float32)
    for ki in range(3):
        for kj in range(3):
            t = ki * 3 + kj
            for oy in range(oh):
                for ox in range(ow):
                    iy = 2 * oy - 1 + ki
                    ix = 2 * ox - 1 + kj
                    if 0 <= iy < h and 0 <= ix < w:
                        s[t, oy * ow + ox, iy * w + ix] = 1.0
    return s


@functools.lru_cache(maxsize=None)
def _c_placement():
    """(C_DIM, 128) 0/1 matrix that drops the latent code into lanes [48:80) of the
    packed output row via a matmul, so the kernel does one unmasked 128-lane store."""
    p = np.zeros((C_DIM, _PACK), np.float32)
    for j in range(C_DIM):
        p[j, _PTS_DIM + j] = 1.0
    return p


def _im2col_s2p1(x):
    """Wrapper-side im2col for conv1 (pure layout plumbing on the external input).

    x: (B, C, H, W) NCHW -> (B, OH*OW, 9*C); column index = tap*C + c (tap = ki*3+kj),
    row index = oy*OW + ox. 3x3 kernel, stride 2, pad 1.
    """
    b, c, h, w = x.shape
    oh, ow = _out_hw(h, w)
    xp = jnp.pad(x, ((0, 0), (0, 0), (1, 1), (1, 1)))
    taps = [xp[:, :, ki:ki + 2 * oh:2, kj:kj + 2 * ow:2]        # (B, C, OH, OW)
            for ki in range(3) for kj in range(3)]
    p = jnp.stack(taps, axis=1)                                  # (B, 9, C, OH, OW)
    p = jnp.transpose(p, (0, 3, 4, 1, 2))                        # (B, OH, OW, 9, C)
    return p.reshape(b, oh * ow, 9 * c)                          # (B, 64, 27)


# ------------------------------- Pallas kernels ----------------------------- #

def _mm(a, b):
    return jnp.dot(a, b, preferred_element_type=jnp.float32)


def _relu(v):
    return jnp.maximum(v, 0.0)


def _conv_taps(h, s_ref, w_ref, b_ref):
    # TODO(synk): these tiny gathers could use strided VMEM slices of a zero-padded
    # scratch instead of 0/1 selector matmuls; kept as matmuls for robust lowering.
    acc = None
    for t in range(9):                                 # static unroll over the 9 taps
        y = _mm(_mm(s_ref[t], h), w_ref[t])            # gather rows, then tap matmul
        acc = y if acc is None else acc + y
    return _relu(acc + b_ref[...])


def _pcgn_kernel(p1_ref, w1_ref, b1_ref,
                 s2_ref, w2_ref, b2_ref,
                 s3_ref, w3_ref, b3_ref,
                 wenc_ref, benc_ref,
                 wd0_ref, bd0_ref, wd1_ref, bd1_ref,
                 wd2p_ref, bd2p_ref, cplace_ref,
                 out_ref):
    """One sample per grid step; every intermediate stays in vregs."""
    # conv1: the 9 taps were pre-gathered by the wrapper -> single K=27 matmul.
    y1 = _relu(_mm(p1_ref[...], w1_ref[...]) + b1_ref[...])      # (64, 8)
    # conv2 / conv3: batch-independent selector gathers + tap matmuls.
    y2 = _conv_taps(y1, s2_ref, w2_ref, b2_ref)                  # (16, 16)
    y3 = _conv_taps(y2, s3_ref, w3_ref, b3_ref)                  # (4, 32)

    # encoder fc: one (32 -> C_DIM) block per spatial position of the 2x2 conv3 output.
    latent = benc_ref[...]                                       # (1, C_DIM)
    for p in range(4):
        latent = latent + _mm(y3[p:p + 1, :], wenc_ref[p])

    # decoder: fc0 -> ReLU -> fc1 -> ReLU -> fc2 (fc2 pre-padded to 128 output lanes
    # so the points land in lanes [0:48) of the packed output row).
    net = _relu(_mm(latent, wd0_ref[...]) + bd0_ref[...])
    net = _relu(_mm(net, wd1_ref[...]) + bd1_ref[...])
    packed = _mm(net, wd2p_ref[...]) + bd2p_ref[...]             # (1, 128)

    # c = F.normalize(latent, dim=1) == latent / max(||latent||, eps); rsqrt -> EUP.
    ss = jnp.sum(latent * latent, axis=1, keepdims=True)
    c = latent * jax.lax.rsqrt(jnp.maximum(ss, _EPS * _EPS))
    # place c into lanes [48:80) with a 0/1 matmul -> one unmasked 128-lane store.
    out_ref[...] = packed + _mm(c, cplace_ref[...])


def _decoder_kernel(c_ref, w0_ref, b0_ref, w1_ref, b1_ref, w2_ref, b2_ref, pts_ref):
    net = _relu(_mm(c_ref[...], w0_ref[...]) + b0_ref[...])
    net = _relu(_mm(net, w1_ref[...]) + b1_ref[...])
    pts_ref[...] = _mm(net, w2_ref[...]) + b2_ref[...]


# ------------------------------ pallas_call glue ----------------------------- #

def _full_spec(shape):
    nd = len(shape)
    return pl.BlockSpec(tuple(int(d) for d in shape), lambda i, _nd=nd: (0,) * _nd)


def _fused_forward(patches1, p, batch):
    s2 = jnp.asarray(_conv_selectors(8, 8))                      # (9, 16, 64)
    s3 = jnp.asarray(_conv_selectors(4, 4))                      # (9, 4, 16)
    cplace = jnp.asarray(_c_placement())                         # (32, 128)
    w1s = p["conv1_w"].reshape(27, 8)                            # taps folded into K
    wd2p = jnp.pad(p["fc2_w"], ((0, 0), (0, _PACK - _PTS_DIM)))  # (64, 128)
    bd2p = jnp.pad(p["fc2_b"], ((0, 0), (0, _PACK - _PTS_DIM)))  # (1, 128)

    consts = (w1s, p["conv1_b"],
              s2, p["conv2_w"], p["conv2_b"],
              s3, p["conv3_w"], p["conv3_b"],
              p["fc_enc_w"], p["fc_enc_b"],
              p["fc0_w"], p["fc0_b"], p["fc1_w"], p["fc1_b"],
              wd2p, bd2p, cplace)

    # TODO(synk): for large batch, process a tile of samples per grid step instead of 1.
    in_specs = ([pl.BlockSpec((None, 64, 27), lambda i: (i, 0, 0))] +
                [_full_spec(a.shape) for a in consts])           # constants stay resident
    out = pl.pallas_call(
        _pcgn_kernel,
        out_shape=jax.ShapeDtypeStruct((batch, 1, _PACK), jnp.float32),
        grid=(batch,),
        in_specs=in_specs,
        out_specs=pl.BlockSpec((None, 1, _PACK), lambda i: (i, 0, 0)),
        compiler_params=pltpu.CompilerParams(dimension_semantics=("parallel",)),
    )(patches1, *consts)
    return out[:, 0, :]                                          # (B, 128)


# ------------------------------- PCGN model ---------------------------------- #

def init_params(key):
    """Weights stored in kernel-ready layouts (no per-forward reshapes of substance)."""
    ks = jax.random.split(key, 7)

    def dense(k, fin, fout):
        w = jax.random.normal(k, (fin, fout), jnp.float32) / np.sqrt(float(fin))
        return w, jnp.zeros((1, fout), jnp.float32)

    def conv(k, cin, cout):
        # tap-major (9, cin, cout), t = ki*3 + kj
        w = jax.random.normal(k, (9, cin, cout), jnp.float32) / np.sqrt(float(9 * cin))
        return w, jnp.zeros((1, cout), jnp.float32)

    c1w, c1b = conv(ks[0], 3, 8)
    c2w, c2b = conv(ks[1], 8, 16)
    c3w, c3b = conv(ks[2], 16, 32)
    # encoder fc over the 4 spatial positions of the (2, 2, 32) conv3 output
    wenc = jax.random.normal(ks[3], (4, C_DIM, C_DIM), jnp.float32) / np.sqrt(4.0 * C_DIM)
    benc = jnp.zeros((1, C_DIM), jnp.float32)
    w0, b0 = dense(ks[4], C_DIM, 64)
    w1, b1 = dense(ks[5], 64, 64)
    w2, b2 = dense(ks[6], 64, _PTS_DIM)
    return {
        "conv1_w": c1w, "conv1_b": c1b,
        "conv2_w": c2w, "conv2_b": c2b,
        "conv3_w": c3w, "conv3_b": c3b,
        "fc_enc_w": wenc, "fc_enc_b": benc,
        "fc0_w": w0, "fc0_b": b0,
        "fc1_w": w1, "fc1_b": b1,
        "fc2_w": w2, "fc2_b": b2,
    }


def pcgn_forward(params, x):
    """PCGN.forward: latent = encoder(x); points = decoder(latent); c = F.normalize(latent)."""
    b = x.shape[0]
    patches1 = _im2col_s2p1(x)                 # layout plumbing only (no FLOPs)
    packed = _fused_forward(patches1, params, b)
    pts = packed[:, :_PTS_DIM].reshape(b, N_POINTS, 3)
    c = packed[:, _PTS_DIM:_PTS_DIM + C_DIM]
    return pts, c


def pcgn_bias(params, c):
    """PCGN.bias: decoder applied directly to a latent code (one fused kernel)."""
    b = c.shape[0]
    inputs = (c, params["fc0_w"], params["fc0_b"], params["fc1_w"], params["fc1_b"],
              params["fc2_w"], params["fc2_b"])
    pts = pl.pallas_call(
        _decoder_kernel,
        out_shape=jax.ShapeDtypeStruct((b, _PTS_DIM), jnp.float32),
        grid=(1,),
        in_specs=[_full_spec(a.shape) for a in inputs],
        out_specs=_full_spec((b, _PTS_DIM)),
        compiler_params=pltpu.CompilerParams(dimension_semantics=("arbitrary",)),
    )(*inputs)
    return pts.reshape(b, N_POINTS, 3)


# --------------------------- plain-JAX reference ------------------------------ #

def _reference_forward(params, x):
    hp = jax.lax.Precision.HIGHEST

    def conv(h, w_taps, bias):
        cin, cout = w_taps.shape[1], w_taps.shape[2]
        w = jnp.transpose(w_taps.reshape(3, 3, cin, cout), (3, 2, 0, 1))   # OIHW
        y = jax.lax.conv_general_dilated(h, w, (2, 2), ((1, 1), (1, 1)),
                                         dimension_numbers=("NCHW", "OIHW", "NCHW"),
                                         precision=hp)
        return jax.nn.relu(y + bias.reshape(1, cout, 1, 1))

    h = conv(x, params["conv1_w"], params["conv1_b"])
    h = conv(h, params["conv2_w"], params["conv2_b"])
    h = conv(h, params["conv3_w"], params["conv3_b"])                      # (B, 32, 2, 2)
    latent = params["fc_enc_b"]
    for p in range(4):
        latent = latent + jnp.dot(h[:, :, p // 2, p % 2], params["fc_enc_w"][p], precision=hp)
    net = jax.nn.relu(jnp.dot(latent, params["fc0_w"], precision=hp) + params["fc0_b"])
    net = jax.nn.relu(jnp.dot(net, params["fc1_w"], precision=hp) + params["fc1_b"])
    pts = jnp.dot(net, params["fc2_w"], precision=hp) + params["fc2_b"]
    norm = jnp.sqrt(jnp.sum(latent * latent, axis=1, keepdims=True))
    c = latent / jnp.maximum(norm, _EPS)
    return pts.reshape(x.shape[0], N_POINTS, 3), c


# ----------------------------------- main ------------------------------------- #

if __name__ == "__main__":
    key = jax.random.PRNGKey(0)
    kp, kx = jax.random.split(key)
    params = init_params(kp)
    x = jax.random.normal(kx, (2, 3, 16, 16), jnp.float32)   # NCHW, like PyTorch

    fwd = jax.jit(pcgn_forward)
    points, c = fwd(params, x)
    jax.block_until_ready((points, c))

    assert points.shape == (2, N_POINTS, 3)
    assert c.shape == (2, C_DIM)
    assert bool(jnp.all(jnp.isfinite(points))) and bool(jnp.all(jnp.isfinite(c)))
    # c rows are unit-norm (F.normalize semantics)
    assert bool(jnp.allclose(jnp.linalg.norm(c, axis=1), 1.0, atol=1e-5))

    # cross-check the fused Pallas forward against a plain-JAX reference
    pts_want, c_want = jax.jit(_reference_forward)(params, x)
    assert bool(jnp.allclose(points, pts_want, atol=1e-3, rtol=1e-3))
    assert bool(jnp.allclose(c, c_want, atol=1e-3, rtol=1e-3))

    # decoder-only path (PCGN.bias)
    pts_b = jax.jit(pcgn_bias)(params, c)
    jax.block_until_ready(pts_b)
    assert pts_b.shape == (2, N_POINTS, 3)
    assert bool(jnp.all(jnp.isfinite(pts_b)))

    print("KERNEL_OK")
</pallas_src>

<mosaic_0001>
module attributes {stable_mosaic.version = 11 : i64} {
  func.func @_pcgn_kernel(%arg0: i32, %arg1: memref<1x64x27xf32, #tpu.memory_space<vmem>>, %arg2: memref<27x8xf32, #tpu.memory_space<vmem>>, %arg3: memref<1x8xf32, #tpu.memory_space<vmem>>, %arg4: memref<9x16x64xf32, #tpu.memory_space<vmem>>, %arg5: memref<9x8x16xf32, #tpu.memory_space<vmem>>, %arg6: memref<1x16xf32, #tpu.memory_space<vmem>>, %arg7: memref<9x4x16xf32, #tpu.memory_space<vmem>>, %arg8: memref<9x16x32xf32, #tpu.memory_space<vmem>>, %arg9: memref<1x32xf32, #tpu.memory_space<vmem>>, %arg10: memref<4x32x32xf32, #tpu.memory_space<vmem>>, %arg11: memref<1x32xf32, #tpu.memory_space<vmem>>, %arg12: memref<32x64xf32, #tpu.memory_space<vmem>>, %arg13: memref<1x64xf32, #tpu.memory_space<vmem>>, %arg14: memref<64x64xf32, #tpu.memory_space<vmem>>, %arg15: memref<1x64xf32, #tpu.memory_space<vmem>>, %arg16: memref<64x128xf32, #tpu.memory_space<vmem>>, %arg17: memref<1x128xf32, #tpu.memory_space<vmem>>, %arg18: memref<32x128xf32, #tpu.memory_space<vmem>>, %arg19: memref<1x1x128xf32, #tpu.memory_space<vmem>>) attributes {dimension_semantics = [#tpu.dimension_semantics<parallel>], iteration_bounds = array<i64: 2>, scalar_prefetch = 0 : i64, scratch_operands = 0 : i64, tpu.core_type = #tpu.core_type<tc>, window_params = [{transform_indices = @transform_0, window_bounds = array<i64: 1, 64, 27>}, {pipeline_mode = #tpu.pipeline_mode<synchronous>, transform_indices = @transform_1, window_bounds = array<i64: 27, 8>}, {pipeline_mode = #tpu.pipeline_mode<synchronous>, transform_indices = @transform_2, window_bounds = array<i64: 1, 8>}, {pipeline_mode = #tpu.pipeline_mode<synchronous>, transform_indices = @transform_3, window_bounds = array<i64: 9, 16, 64>}, {pipeline_mode = #tpu.pipeline_mode<synchronous>, transform_indices = @transform_4, window_bounds = array<i64: 9, 8, 16>}, {pipeline_mode = #tpu.pipeline_mode<synchronous>, transform_indices = @transform_5, window_bounds = array<i64: 1, 16>}, {pipeline_mode = #tpu.pipeline_mode<synchronous>, transform_indices = @transform_6, window_bounds = array<i64: 9, 4, 16>}, {pipeline_mode = #tpu.pipeline_mode<synchronous>, transform_indices = @transform_7, window_bounds = array<i64: 9, 16, 32>}, {pipeline_mode = #tpu.pipeline_mode<synchronous>, transform_indices = @transform_8, window_bounds = array<i64: 1, 32>}, {pipeline_mode = #tpu.pipeline_mode<synchronous>, transform_indices = @transform_9, window_bounds = array<i64: 4, 32, 32>}, {pipeline_mode = #tpu.pipeline_mode<synchronous>, transform_indices = @transform_10, window_bounds = array<i64: 1, 32>}, {pipeline_mode = #tpu.pipeline_mode<synchronous>, transform_indices = @transform_11, window_bounds = array<i64: 32, 64>}, {pipeline_mode = #tpu.pipeline_mode<synchronous>, transform_indices = @transform_12, window_bounds = array<i64: 1, 64>}, {pipeline_mode = #tpu.pipeline_mode<synchronous>, transform_indices = @transform_13, window_bounds = array<i64: 64, 64>}, {pipeline_mode = #tpu.pipeline_mode<synchronous>, transform_indices = @transform_14, window_bounds = array<i64: 1, 64>}, {pipeline_mode = #tpu.pipeline_mode<synchronous>, transform_indices = @transform_15, window_bounds = array<i64: 64, 128>}, {pipeline_mode = #tpu.pipeline_mode<synchronous>, transform_indices = @transform_16, window_bounds = array<i64: 1, 128>}, {pipeline_mode = #tpu.pipeline_mode<synchronous>, transform_indices = @transform_17, window_bounds = array<i64: 32, 128>}, {transform_indices = @transform_18, window_bounds = array<i64: 1, 1, 128>}]} {
    %c0 = arith.constant 0 : index
    %c0_0 = arith.constant 0 : index
    %c0_1 = arith.constant 0 : index
    %0 = vector.load %arg1[%c0, %c0_0, %c0_1] : memref<1x64x27xf32, #tpu.memory_space<vmem>>, vector<1x64x27xf32>
    %1 = vector.shape_cast %0 : vector<1x64x27xf32> to vector<64x27xf32>
    %c0_2 = arith.constant 0 : index
    %c0_3 = arith.constant 0 : index
    %2 = vector.load %arg2[%c0_2, %c0_3] : memref<27x8xf32, #tpu.memory_space<vmem>>, vector<27x8xf32>
    %cst = arith.constant dense<0.000000e+00> : vector<64x8xf32>
    %3 = tpu.matmul %1, %2, %cst {dimension_numbers = #tpu.dot_dimension_numbers<[1], [0], [0], [1], [0, 0, 1, 1], [], []>} : vector<64x27xf32>, vector<27x8xf32>, vector<64x8xf32> -> vector<64x8xf32>
    %c0_4 = arith.constant 0 : index
    %c0_5 = arith.constant 0 : index
    %4 = vector.load %arg3[%c0_4, %c0_5] : memref<1x8xf32, #tpu.memory_space<vmem>>, vector<1x8xf32>
    %5 = vector.broadcast %4 : vector<1x8xf32> to vector<64x8xf32>
    %6 = arith.addf %3, %5 : vector<64x8xf32>
    %cst_6 = arith.constant 0.000000e+00 : f32
    %7 = vector.broadcast %cst_6 : f32 to vector<64x8xf32>
    %8 = arith.maximumf %6, %7 : vector<64x8xf32>
    %c0_7 = arith.constant 0 : index
    %c0_8 = arith.constant 0 : index
    %c0_9 = arith.constant 0 : index
    %9 = vector.load %arg4[%c0_7, %c0_8, %c0_9] : memref<9x16x64xf32, #tpu.memory_space<vmem>>, vector<1x16x64xf32>
    %10 = vector.shape_cast %9 : vector<1x16x64xf32> to vector<16x64xf32>
    %cst_10 = arith.constant dense<0.000000e+00> : vector<16x8xf32>
    %11 = tpu.matmul %10, %8, %cst_10 {dimension_numbers = #tpu.dot_dimension_numbers<[1], [0], [0], [1], [0, 0, 1, 1], [], []>} : vector<16x64xf32>, vector<64x8xf32>, vector<16x8xf32> -> vector<16x8xf32>
    %c0_11 = arith.constant 0 : index
    %c0_12 = arith.constant 0 : index
    %c0_13 = arith.constant 0 : index
    %12 = vector.load %arg5[%c0_11, %c0_12, %c0_13] : memref<9x8x16xf32, #tpu.memory_space<vmem>>, vector<1x8x16xf32>
    %13 = vector.shape_cast %12 : vector<1x8x16xf32> to vector<8x16xf32>
    %cst_14 = arith.constant dense<0.000000e+00> : vector<16x16xf32>
    %14 = tpu.matmul %11, %13, %cst_14 {dimension_numbers = #tpu.dot_dimension_numbers<[1], [0], [0], [1], [0, 0, 1, 1], [], []>} : vector<16x8xf32>, vector<8x16xf32>, vector<16x16xf32> -> vector<16x16xf32>
    %c1 = arith.constant 1 : index
    %c0_15 = arith.constant 0 : index
    %c0_16 = arith.constant 0 : index
    %15 = vector.load %arg4[%c1, %c0_15, %c0_16] : memref<9x16x64xf32, #tpu.memory_space<vmem>>, vector<1x16x64xf32>
    %16 = vector.shape_cast %15 : vector<1x16x64xf32> to vector<16x64xf32>
    %cst_17 = arith.constant dense<0.000000e+00> : vector<16x8xf32>
    %17 = tpu.matmul %16, %8, %cst_17 {dimension_numbers = #tpu.dot_dimension_numbers<[1], [0], [0], [1], [0, 0, 1, 1], [], []>} : vector<16x64xf32>, vector<64x8xf32>, vector<16x8xf32> -> vector<16x8xf32>
    %c1_18 = arith.constant 1 : index
    %c0_19 = arith.constant 0 : index
    %c0_20 = arith.constant 0 : index
    %18 = vector.load %arg5[%c1_18, %c0_19, %c0_20] : memref<9x8x16xf32, #tpu.memory_space<vmem>>, vector<1x8x16xf32>
    %19 = vector.shape_cast %18 : vector<1x8x16xf32> to vector<8x16xf32>
    %cst_21 = arith.constant dense<0.000000e+00> : vector<16x16xf32>
    %20 = tpu.matmul %17, %19, %cst_21 {dimension_numbers = #tpu.dot_dimension_numbers<[1], [0], [0], [1], [0, 0, 1, 1], [], []>} : vector<16x8xf32>, vector<8x16xf32>, vector<16x16xf32> -> vector<16x16xf32>
    %21 = arith.addf %14, %20 : vector<16x16xf32>
    %c2 = arith.constant 2 : index
    %c0_22 = arith.constant 0 : index
    %c0_23 = arith.constant 0 : index
    %22 = vector.load %arg4[%c2, %c0_22, %c0_23] : memref<9x16x64xf32, #tpu.memory_space<vmem>>, vector<1x16x64xf32>
    %23 = vector.shape_cast %22 : vector<1x16x64xf32> to vector<16x64xf32>
    %cst_24 = arith.constant dense<0.000000e+00> : vector<16x8xf32>
    %24 = tpu.matmul %23, %8, %cst_24 {dimension_numbers = #tpu.dot_dimension_numbers<[1], [0], [0], [1], [0, 0, 1, 1], [], []>} : vector<16x64xf32>, vector<64x8xf32>, vector<16x8xf32> -> vector<16x8xf32>
    %c2_25 = arith.constant 2 : index
    %c0_26 = arith.constant 0 : index
    %c0_27 = arith.constant 0 : index
    %25 = vector.load %arg5[%c2_25, %c0_26, %c0_27] : memref<9x8x16xf32, #tpu.memory_space<vmem>>, vector<1x8x16xf32>
    %26 = vector.shape_cast %25 : vector<1x8x16xf32> to vector<8x16xf32>
    %cst_28 = arith.constant dense<0.000000e+00> : vector<16x16xf32>
    %27 = tpu.matmul %24, %26, %cst_28 {dimension_numbers = #tpu.dot_dimension_numbers<[1], [0], [0], [1], [0, 0, 1, 1], [], []>} : vector<16x8xf32>, vector<8x16xf32>, vector<16x16xf32> -> vector<16x16xf32>
    %28 = arith.addf %21, %27 : vector<16x16xf32>
    %c3 = arith.constant 3 : index
    %c0_29 = arith.constant 0 : index
    %c0_30 = arith.constant 0 : index
    %29 = vector.load %arg4[%c3, %c0_29, %c0_30] : memref<9x16x64xf32, #tpu.memory_space<vmem>>, vector<1x16x64xf32>
    %30 = vector.shape_cast %29 : vector<1x16x64xf32> to vector<16x64xf32>
    %cst_31 = arith.constant dense<0.000000e+00> : vector<16x8xf32>
    %31 = tpu.matmul %30, %8, %cst_31 {dimension_numbers = #tpu.dot_dimension_numbers<[1], [0], [0], [1], [0, 0, 1, 1], [], []>} : vector<16x64xf32>, vector<64x8xf32>, vector<16x8xf32> -> vector<16x8xf32>
    %c3_32 = arith.constant 3 : index
    %c0_33 = arith.constant 0 : index
    %c0_34 = arith.constant 0 : index
    %32 = vector.load %arg5[%c3_32, %c0_33, %c0_34] : memref<9x8x16xf32, #tpu.memory_space<vmem>>, vector<1x8x16xf32>
    %33 = vector.shape_cast %32 : vector<1x8x16xf32> to vector<8x16xf32>
    %cst_35 = arith.constant dense<0.000000e+00> : vector<16x16xf32>
    %34 = tpu.matmul %31, %33, %cst_35 {dimension_numbers = #tpu.dot_dimension_numbers<[1], [0], [0], [1], [0, 0, 1, 1], [], []>} : vector<16x8xf32>, vector<8x16xf32>, vector<16x16xf32> -> vector<16x16xf32>
    %35 = arith.addf %28, %34 : vector<16x16xf32>
    %c4 = arith.constant 4 : index
    %c0_36 = arith.constant 0 : index
    %c0_37 = arith.constant 0 : index
    %36 = vector.load %arg4[%c4, %c0_36, %c0_37] : memref<9x16x64xf32, #tpu.memory_space<vmem>>, vector<1x16x64xf32>
    %37 = vector.shape_cast %36 : vector<1x16x64xf32> to vector<16x64xf32>
    %cst_38 = arith.constant dense<0.000000e+00> : vector<16x8xf32>
    %38 = tpu.matmul %37, %8, %cst_38 {dimension_numbers = #tpu.dot_dimension_numbers<[1], [0], [0], [1], [0, 0, 1, 1], [], []>} : vector<16x64xf32>, vector<64x8xf32>, vector<16x8xf32> -> vector<16x8xf32>
    %c4_39 = arith.constant 4 : index
    %c0_40 = arith.constant 0 : index
    %c0_41 = arith.constant 0 : index
    %39 = vector.load %arg5[%c4_39, %c0_40, %c0_41] : memref<9x8x16xf32, #tpu.memory_space<vmem>>, vector<1x8x16xf32>
    %40 = vector.shape_cast %39 : vector<1x8x16xf32> to vector<8x16xf32>
    %cst_42 = arith.constant dense<0.000000e+00> : vector<16x16xf32>
    %41 = tpu.matmul %38, %40, %cst_42 {dimension_numbers = #tpu.dot_dimension_numbers<[1], [0], [0], [1], [0, 0, 1, 1], [], []>} : vector<16x8xf32>, vector<8x16xf32>, vector<16x16xf32> -> vector<16x16xf32>
    %42 = arith.addf %35, %41 : vector<16x16xf32>
    %c5 = arith.constant 5 : index
    %c0_43 = arith.constant 0 : index
    %c0_44 = arith.constant 0 : index
    %43 = vector.load %arg4[%c5, %c0_43, %c0_44] : memref<9x16x64xf32, #tpu.memory_space<vmem>>, vector<1x16x64xf32>
    %44 = vector.shape_cast %43 : vector<1x16x64xf32> to vector<16x64xf32>
    %cst_45 = arith.constant dense<0.000000e+00> : vector<16x8xf32>
    %45 = tpu.matmul %44, %8, %cst_45 {dimension_numbers = #tpu.dot_dimension_numbers<[1], [0], [0], [1], [0, 0, 1, 1], [], []>} : vector<16x64xf32>, vector<64x8xf32>, vector<16x8xf32> -> vector<16x8xf32>
    %c5_46 = arith.constant 5 : index
    %c0_47 = arith.constant 0 : index
    %c0_48 = arith.constant 0 : index
    %46 = vector.load %arg5[%c5_46, %c0_47, %c0_48] : memref<9x8x16xf32, #tpu.memory_space<vmem>>, vector<1x8x16xf32>
    %47 = vector.shape_cast %46 : vector<1x8x16xf32> to vector<8x16xf32>
    %cst_49 = arith.constant dense<0.000000e+00> : vector<16x16xf32>
    %48 = tpu.matmul %45, %47, %cst_49 {dimension_numbers = #tpu.dot_dimension_numbers<[1], [0], [0], [1], [0, 0, 1, 1], [], []>} : vector<16x8xf32>, vector<8x16xf32>, vector<16x16xf32> -> vector<16x16xf32>
    %49 = arith.addf %42, %48 : vector<16x16xf32>
    %c6 = arith.constant 6 : index
    %c0_50 = arith.constant 0 : index
    %c0_51 = arith.constant 0 : index
    %50 = vector.load %arg4[%c6, %c0_50, %c0_51] : memref<9x16x64xf32, #tpu.memory_space<vmem>>, vector<1x16x64xf32>
    %51 = vector.shape_cast %50 : vector<1x16x64xf32> to vector<16x64xf32>
    %cst_52 = arith.constant dense<0.000000e+00> : vector<16x8xf32>
    %52 = tpu.matmul %51, %8, %cst_52 {dimension_numbers = #tpu.dot_dimension_numbers<[1], [0], [0], [1], [0, 0, 1, 1], [], []>} : vector<16x64xf32>, vector<64x8xf32>, vector<16x8xf32> -> vector<16x8xf32>
    %c6_53 = arith.constant 6 : index
    %c0_54 = arith.constant 0 : index
    %c0_55 = arith.constant 0 : index
    %53 = vector.load %arg5[%c6_53, %c0_54, %c0_55] : memref<9x8x16xf32, #tpu.memory_space<vmem>>, vector<1x8x16xf32>
    %54 = vector.shape_cast %53 : vector<1x8x16xf32> to vector<8x16xf32>
    %cst_56 = arith.constant dense<0.000000e+00> : vector<16x16xf32>
    %55 = tpu.matmul %52, %54, %cst_56 {dimension_numbers = #tpu.dot_dimension_numbers<[1], [0], [0], [1], [0, 0, 1, 1], [], []>} : vector<16x8xf32>, vector<8x16xf32>, vector<16x16xf32> -> vector<16x16xf32>
    %56 = arith.addf %49, %55 : vector<16x16xf32>
    %c7 = arith.constant 7 : index
    %c0_57 = arith.constant 0 : index
    %c0_58 = arith.constant 0 : index
    %57 = vector.load %arg4[%c7, %c0_57, %c0_58] : memref<9x16x64xf32, #tpu.memory_space<vmem>>, vector<1x16x64xf32>
    %58 = vector.shape_cast %57 : vector<1x16x64xf32> to vector<16x64xf32>
    %cst_59 = arith.constant dense<0.000000e+00> : vector<16x8xf32>
    %59 = tpu.matmul %58, %8, %cst_59 {dimension_numbers = #tpu.dot_dimension_numbers<[1], [0], [0], [1], [0, 0, 1, 1], [], []>} : vector<16x64xf32>, vector<64x8xf32>, vector<16x8xf32> -> vector<16x8xf32>
    %c7_60 = arith.constant 7 : index
    %c0_61 = arith.constant 0 : index
    %c0_62 = arith.constant 0 : index
    %60 = vector.load %arg5[%c7_60, %c0_61, %c0_62] : memref<9x8x16xf32, #tpu.memory_space<vmem>>, vector<1x8x16xf32>
    %61 = vector.shape_cast %60 : vector<1x8x16xf32> to vector<8x16xf32>
    %cst_63 = arith.constant dense<0.000000e+00> : vector<16x16xf32>
    %62 = tpu.matmul %59, %61, %cst_63 {dimension_numbers = #tpu.dot_dimension_numbers<[1], [0], [0], [1], [0, 0, 1, 1], [], []>} : vector<16x8xf32>, vector<8x16xf32>, vector<16x16xf32> -> vector<16x16xf32>
    %63 = arith.addf %56, %62 : vector<16x16xf32>
    %c8 = arith.constant 8 : index
    %c0_64 = arith.constant 0 : index
    %c0_65 = arith.constant 0 : index
    %64 = vector.load %arg4[%c8, %c0_64, %c0_65] : memref<9x16x64xf32, #tpu.memory_space<vmem>>, vector<1x16x64xf32>
    %65 = vector.shape_cast %64 : vector<1x16x64xf32> to vector<16x64xf32>
    %cst_66 = arith.constant dense<0.000000e+00> : vector<16x8xf32>
    %66 = tpu.matmul %65, %8, %cst_66 {dimension_numbers = #tpu.dot_dimension_numbers<[1], [0], [0], [1], [0, 0, 1, 1], [], []>} : vector<16x64xf32>, vector<64x8xf32>, vector<16x8xf32> -> vector<16x8xf32>
    %c8_67 = arith.constant 8 : index
    %c0_68 = arith.constant 0 : index
    %c0_69 = arith.constant 0 : index
    %67 = vector.load %arg5[%c8_67, %c0_68, %c0_69] : memref<9x8x16xf32, #tpu.memory_space<vmem>>, vector<1x8x16xf32>
    %68 = vector.shape_cast %67 : vector<1x8x16xf32> to vector<8x16xf32>
    %cst_70 = arith.constant dense<0.000000e+00> : vector<16x16xf32>
    %69 = tpu.matmul %66, %68, %cst_70 {dimension_numbers = #tpu.dot_dimension_numbers<[1], [0], [0], [1], [0, 0, 1, 1], [], []>} : vector<16x8xf32>, vector<8x16xf32>, vector<16x16xf32> -> vector<16x16xf32>
    %70 = arith.addf %63, %69 : vector<16x16xf32>
    %c0_71 = arith.constant 0 : index
    %c0_72 = arith.constant 0 : index
    %71 = vector.load %arg6[%c0_71, %c0_72] : memref<1x16xf32, #tpu.memory_space<vmem>>, vector<1x16xf32>
    %72 = vector.broadcast %71 : vector<1x16xf32> to vector<16x16xf32>
    %73 = arith.addf %70, %72 : vector<16x16xf32>
    %cst_73 = arith.constant 0.000000e+00 : f32
    %74 = vector.broadcast %cst_73 : f32 to vector<16x16xf32>
    %75 = arith.maximumf %73, %74 : vector<16x16xf32>
    %c0_74 = arith.constant 0 : index
    %c0_75 = arith.constant 0 : index
    %c0_76 = arith.constant 0 : index
    %76 = vector.load %arg7[%c0_74, %c0_75, %c0_76] : memref<9x4x16xf32, #tpu.memory_space<vmem>>, vector<1x4x16xf32>
    %77 = vector.shape_cast %76 : vector<1x4x16xf32> to vector<4x16xf32>
    %cst_77 = arith.constant dense<0.000000e+00> : vector<4x16xf32>
    %78 = tpu.matmul %77, %75, %cst_77 {dimension_numbers = #tpu.dot_dimension_numbers<[1], [0], [0], [1], [0, 0, 1, 1], [], []>} : vector<4x16xf32>, vector<16x16xf32>, vector<4x16xf32> -> vector<4x16xf32>
    %c0_78 = arith.constant 0 : index
    %c0_79 = arith.constant 0 : index
    %c0_80 = arith.constant 0 : index
    %79 = vector.load %arg8[%c0_78, %c0_79, %c0_80] : memref<9x16x32xf32, #tpu.memory_space<vmem>>, vector<1x16x32xf32>
    %80 = vector.shape_cast %79 : vector<1x16x32xf32> to vector<16x32xf32>
    %cst_81 = arith.constant dense<0.000000e+00> : vector<4x32xf32>
    %81 = tpu.matmul %78, %80, %cst_81 {dimension_numbers = #tpu.dot_dimension_numbers<[1], [0], [0], [1], [0, 0, 1, 1], [], []>} : vector<4x16xf32>, vector<16x32xf32>, vector<4x32xf32> -> vector<4x32xf32>
    %c1_82 = arith.constant 1 : index
    %c0_83 = arith.constant 0 : index
    %c0_84 = arith.constant 0 : index
    %82 = vector.load %arg7[%c1_82, %c0_83, %c0_84] : memref<9x4x16xf32, #tpu.memory_space<vmem>>, vector<1x4x16xf32>
    %83 = vector.shape_cast %82 : vector<1x4x16xf32> to vector<4x16xf32>
    %cst_85 = arith.constant dense<0.000000e+00> : vector<4x16xf32>
    %84 = tpu.matmul %83, %75, %cst_85 {dimension_numbers = #tpu.dot_dimension_numbers<[1], [0], [0], [1], [0, 0, 1, 1], [], []>} : vector<4x16xf32>, vector<16x16xf32>, vector<4x16xf32> -> vector<4x16xf32>
    %c1_86 = arith.constant 1 : index
    %c0_87 = arith.constant 0 : index
    %c0_88 = arith.constant 0 : index
    %85 = vector.load %arg8[%c1_86, %c0_87, %c0_88] : memref<9x16x32xf32, #tpu.memory_space<vmem>>, vector<1x16x32xf32>
    %86 = vector.shape_cast %85 : vector<1x16x32xf32> to vector<16x32xf32>
    %cst_89 = arith.constant dense<0.000000e+00> : vector<4x32xf32>
    %87 = tpu.matmul %84, %86, %cst_89 {dimension_numbers = #tpu.dot_dimension_numbers<[1], [0], [0], [1], [0, 0, 1, 1], [], []>} : vector<4x16xf32>, vector<16x32xf32>, vector<4x32xf32> -> vector<4x32xf32>
    %88 = arith.addf %81, %87 : vector<4x32xf32>
    %c2_90 = arith.constant 2 : index
    %c0_91 = arith.constant 0 : index
    %c0_92 = arith.constant 0 : index
    %89 = vector.load %arg7[%c2_90, %c0_91, %c0_92] : memref<9x4x16xf32, #tpu.memory_space<vmem>>, vector<1x4x16xf32>
    %90 = vector.shape_cast %89 : vector<1x4x16xf32> to vector<4x16xf32>
    %cst_93 = arith.constant dense<0.000000e+00> : vector<4x16xf32>
    %91 = tpu.matmul %90, %75, %cst_93 {dimension_numbers = #tpu.dot_dimension_numbers<[1], [0], [0], [1], [0, 0, 1, 1], [], []>} : vector<4x16xf32>, vector<16x16xf32>, vector<4x16xf32> -> vector<4x16xf32>
    %c2_94 = arith.constant 2 : index
    %c0_95 = arith.constant 0 : index
    %c0_96 = arith.constant 0 : index
    %92 = vector.load %arg8[%c2_94, %c0_95, %c0_96] : memref<9x16x32xf32, #tpu.memory_space<vmem>>, vector<1x16x32xf32>
    %93 = vector.shape_cast %92 : vector<1x16x32xf32> to vector<16x32xf32>
    %cst_97 = arith.constant dense<0.000000e+00> : vector<4x32xf32>
    %94 = tpu.matmul %91, %93, %cst_97 {dimension_numbers = #tpu.dot_dimension_numbers<[1], [0], [0], [1], [0, 0, 1, 1], [], []>} : vector<4x16xf32>, vector<16x32xf32>, vector<4x32xf32> -> vector<4x32xf32>
    %95 = arith.addf %88, %94 : vector<4x32xf32>
    %c3_98 = arith.constant 3 : index
    %c0_99 = arith.constant 0 : index
    %c0_100 = arith.constant 0 : index
    %96 = vector.load %arg7[%c3_98, %c0_99, %c0_100] : memref<9x4x16xf32, #tpu.memory_space<vmem>>, vector<1x4x16xf32>
    %97 = vector.shape_cast %96 : vector<1x4x16xf32> to vector<4x16xf32>
    %cst_101 = arith.constant dense<0.000000e+00> : vector<4x16xf32>
    %98 = tpu.matmul %97, %75, %cst_101 {dimension_numbers = #tpu.dot_dimension_numbers<[1], [0], [0], [1], [0, 0, 1, 1], [], []>} : vector<4x16xf32>, vector<16x16xf32>, vector<4x16xf32> -> vector<4x16xf32>
    %c3_102 = arith.constant 3 : index
    %c0_103 = arith.constant 0 : index
    %c0_104 = arith.constant 0 : index
    %99 = vector.load %arg8[%c3_102, %c0_103, %c0_104] : memref<9x16x32xf32, #tpu.memory_space<vmem>>, vector<1x16x32xf32>
    %100 = vector.shape_cast %99 : vector<1x16x32xf32> to vector<16x32xf32>
    %cst_105 = arith.constant dense<0.000000e+00> : vector<4x32xf32>
    %101 = tpu.matmul %98, %100, %cst_105 {dimension_numbers = #tpu.dot_dimension_numbers<[1], [0], [0], [1], [0, 0, 1, 1], [], []>} : vector<4x16xf32>, vector<16x32xf32>, vector<4x32xf32> -> vector<4x32xf32>
    %102 = arith.addf %95, %101 : vector<4x32xf32>
    %c4_106 = arith.constant 4 : index
    %c0_107 = arith.constant 0 : index
    %c0_108 = arith.constant 0 : index
    %103 = vector.load %arg7[%c4_106, %c0_107, %c0_108] : memref<9x4x16xf32, #tpu.memory_space<vmem>>, vector<1x4x16xf32>
    %104 = vector.shape_cast %103 : vector<1x4x16xf32> to vector<4x16xf32>
    %cst_109 = arith.constant dense<0.000000e+00> : vector<4x16xf32>
    %105 = tpu.matmul %104, %75, %cst_109 {dimension_numbers = #tpu.dot_dimension_numbers<[1], [0], [0], [1], [0, 0, 1, 1], [], []>} : vector<4x16xf32>, vector<16x16xf32>, vector<4x16xf32> -> vector<4x16xf32>
    %c4_110 = arith.constant 4 : index
    %c0_111 = arith.constant 0 : index
    %c0_112 = arith.constant 0 : index
    %106 = vector.load %arg8[%c4_110, %c0_111, %c0_112] : memref<9x16x32xf32, #tpu.memory_space<vmem>>, vector<1x16x32xf32>
    %107 = vector.shape_cast %106 : vector<1x16x32xf32> to vector<16x32xf32>
    %cst_113 = arith.constant dense<0.000000e+00> : vector<4x32xf32>
    %108 = tpu.matmul %105, %107, %cst_113 {dimension_numbers = #tpu.dot_dimension_numbers<[1], [0], [0], [1], [0, 0, 1, 1], [], []>} : vector<4x16xf32>, vector<16x32xf32>, vector<4x32xf32> -> vector<4x32xf32>
    %109 = arith.addf %102, %108 : vector<4x32xf32>
    %c5_114 = arith.constant 5 : index
    %c0_115 = arith.constant 0 : index
    %c0_116 = arith.constant 0 : index
    %110 = vector.load %arg7[%c5_114, %c0_115, %c0_116] : memref<9x4x16xf32, #tpu.memory_space<vmem>>, vector<1x4x16xf32>
    %111 = vector.shape_cast %110 : vector<1x4x16xf32> to vector<4x16xf32>
    %cst_117 = arith.constant dense<0.000000e+00> : vector<4x16xf32>
    %112 = tpu.matmul %111, %75, %cst_117 {dimension_numbers = #tpu.dot_dimension_numbers<[1], [0], [0], [1], [0, 0, 1, 1], [], []>} : vector<4x16xf32>, vector<16x16xf32>, vector<4x16xf32> -> vector<4x16xf32>
    %c5_118 = arith.constant 5 : index
    %c0_119 = arith.constant 0 : index
    %c0_120 = arith.constant 0 : index
    %113 = vector.load %arg8[%c5_118, %c0_119, %c0_120] : memref<9x16x32xf32, #tpu.memory_space<vmem>>, vector<1x16x32xf32>
    %114 = vector.shape_cast %113 : vector<1x16x32xf32> to vector<16x32xf32>
    %cst_121 = arith.constant dense<0.000000e+00> : vector<4x32xf32>
    %115 = tpu.matmul %112, %114, %cst_121 {dimension_numbers = #tpu.dot_dimension_numbers<[1], [0], [0], [1], [0, 0, 1, 1], [], []>} : vector<4x16xf32>, vector<16x32xf32>, vector<4x32xf32> -> vector<4x32xf32>
    %116 = arith.addf %109, %115 : vector<4x32xf32>
    %c6_122 = arith.constant 6 : index
    %c0_123 = arith.constant 0 : index
    %c0_124 = arith.constant 0 : index
    %117 = vector.load %arg7[%c6_122, %c0_123, %c0_124] : memref<9x4x16xf32, #tpu.memory_space<vmem>>, vector<1x4x16xf32>
    %118 = vector.shape_cast %117 : vector<1x4x16xf32> to vector<4x16xf32>
    %cst_125 = arith.constant dense<0.000000e+00> : vector<4x16xf32>
    %119 = tpu.matmul %118, %75, %cst_125 {dimension_numbers = #tpu.dot_dimension_numbers<[1], [0], [0], [1], [0, 0, 1, 1], [], []>} : vector<4x16xf32>, vector<16x16xf32>, vector<4x16xf32> -> vector<4x16xf32>
    %c6_126 = arith.constant 6 : index
    %c0_127 = arith.constant 0 : index
    %c0_128 = arith.constant 0 : index
    %120 = vector.load %arg8[%c6_126, %c0_127, %c0_128] : memref<9x16x32xf32, #tpu.memory_space<vmem>>, vector<1x16x32xf32>
    %121 = vector.shape_cast %120 : vector<1x16x32xf32> to vector<16x32xf32>
    %cst_129 = arith.constant dense<0.000000e+00> : vector<4x32xf32>
    %122 = tpu.matmul %119, %121, %cst_129 {dimension_numbers = #tpu.dot_dimension_numbers<[1], [0], [0], [1], [0, 0, 1, 1], [], []>} : vector<4x16xf32>, vector<16x32xf32>, vector<4x32xf32> -> vector<4x32xf32>
    %123 = arith.addf %116, %122 : vector<4x32xf32>
    %c7_130 = arith.constant 7 : index
    %c0_131 = arith.constant 0 : index
    %c0_132 = arith.constant 0 : index
    %124 = vector.load %arg7[%c7_130, %c0_131, %c0_132] : memref<9x4x16xf32, #tpu.memory_space<vmem>>, vector<1x4x16xf32>
    %125 = vector.shape_cast %124 : vector<1x4x16xf32> to vector<4x16xf32>
    %cst_133 = arith.constant dense<0.000000e+00> : vector<4x16xf32>
    %126 = tpu.matmul %125, %75, %cst_133 {dimension_numbers = #tpu.dot_dimension_numbers<[1], [0], [0], [1], [0, 0, 1, 1], [], []>} : vector<4x16xf32>, vector<16x16xf32>, vector<4x16xf32> -> vector<4x16xf32>
    %c7_134 = arith.constant 7 : index
    %c0_135 = arith.constant 0 : index
    %c0_136 = arith.constant 0 : index
    %127 = vector.load %arg8[%c7_134, %c0_135, %c0_136] : memref<9x16x32xf32, #tpu.memory_space<vmem>>, vector<1x16x32xf32>
    %128 = vector.shape_cast %127 : vector<1x16x32xf32> to vector<16x32xf32>
    %cst_137 = arith.constant dense<0.000000e+00> : vector<4x32xf32>
    %129 = tpu.matmul %126, %128, %cst_137 {dimension_numbers = #tpu.dot_dimension_numbers<[1], [0], [0], [1], [0, 0, 1, 1], [], []>} : vector<4x16xf32>, vector<16x32xf32>, vector<4x32xf32> -> vector<4x32xf32>
    %130 = arith.addf %123, %129 : vector<4x32xf32>
    %c8_138 = arith.constant 8 : index
    %c0_139 = arith.constant 0 : index
    %c0_140 = arith.constant 0 : index
    %131 = vector.load %arg7[%c8_138, %c0_139, %c0_140] : memref<9x4x16xf32, #tpu.memory_space<vmem>>, vector<1x4x16xf32>
    %132 = vector.shape_cast %131 : vector<1x4x16xf32> to vector<4x16xf32>
    %cst_141 = arith.constant dense<0.000000e+00> : vector<4x16xf32>
    %133 = tpu.matmul %132, %75, %cst_141 {dimension_numbers = #tpu.dot_dimension_numbers<[1], [0], [0], [1], [0, 0, 1, 1], [], []>} : vector<4x16xf32>, vector<16x16xf32>, vector<4x16xf32> -> vector<4x16xf32>
    %c8_142 = arith.constant 8 : index
    %c0_143 = arith.constant 0 : index
    %c0_144 = arith.constant 0 : index
    %134 = vector.load %arg8[%c8_142, %c0_143, %c0_144] : memref<9x16x32xf32, #tpu.memory_space<vmem>>, vector<1x16x32xf32>
    %135 = vector.shape_cast %134 : vector<1x16x32xf32> to vector<16x32xf32>
    %cst_145 = arith.constant dense<0.000000e+00> : vector<4x32xf32>
    %136 = tpu.matmul %133, %135, %cst_145 {dimension_numbers = #tpu.dot_dimension_numbers<[1], [0], [0], [1], [0, 0, 1, 1], [], []>} : vector<4x16xf32>, vector<16x32xf32>, vector<4x32xf32> -> vector<4x32xf32>
    %137 = arith.addf %130, %136 : vector<4x32xf32>
    %c0_146 = arith.constant 0 : index
    %c0_147 = arith.constant 0 : index
    %138 = vector.load %arg9[%c0_146, %c0_147] : memref<1x32xf32, #tpu.memory_space<vmem>>, vector<1x32xf32>
    %139 = vector.broadcast %138 : vector<1x32xf32> to vector<4x32xf32>
    %140 = arith.addf %137, %139 : vector<4x32xf32>
    %cst_148 = arith.constant 0.000000e+00 : f32
    %141 = vector.broadcast %cst_148 : f32 to vector<4x32xf32>
    %142 = arith.maximumf %140, %141 : vector<4x32xf32>
    %c0_149 = arith.constant 0 : index
    %c0_150 = arith.constant 0 : index
    %143 = vector.load %arg11[%c0_149, %c0_150] : memref<1x32xf32, #tpu.memory_space<vmem>>, vector<1x32xf32>
    %144 = vector.extract_strided_slice %142 {offsets = [0, 0], sizes = [1, 32], strides = [1, 1]} : vector<4x32xf32> to vector<1x32xf32>
    %c0_151 = arith.constant 0 : index
    %c0_152 = arith.constant 0 : index
    %c0_153 = arith.constant 0 : index
    %145 = vector.load %arg10[%c0_151, %c0_152, %c0_153] : memref<4x32x32xf32, #tpu.memory_space<vmem>>, vector<1x32x32xf32>
    %146 = vector.shape_cast %145 : vector<1x32x32xf32> to vector<32x32xf32>
    %cst_154 = arith.constant dense<0.000000e+00> : vector<1x32xf32>
    %147 = tpu.matmul %144, %146, %cst_154 {dimension_numbers = #tpu.dot_dimension_numbers<[1], [0], [0], [1], [0, 0, 1, 1], [], []>} : vector<1x32xf32>, vector<32x32xf32>, vector<1x32xf32> -> vector<1x32xf32>
    %148 = arith.addf %143, %147 : vector<1x32xf32>
    %149 = vector.extract_strided_slice %142 {offsets = [1, 0], sizes = [1, 32], strides = [1, 1]} : vector<4x32xf32> to vector<1x32xf32>
    %c1_155 = arith.constant 1 : index
    %c0_156 = arith.constant 0 : index
    %c0_157 = arith.constant 0 : index
    %150 = vector.load %arg10[%c1_155, %c0_156, %c0_157] : memref<4x32x32xf32, #tpu.memory_space<vmem>>, vector<1x32x32xf32>
    %151 = vector.shape_cast %150 : vector<1x32x32xf32> to vector<32x32xf32>
    %cst_158 = arith.constant dense<0.000000e+00> : vector<1x32xf32>
    %152 = tpu.matmul %149, %151, %cst_158 {dimension_numbers = #tpu.dot_dimension_numbers<[1], [0], [0], [1], [0, 0, 1, 1], [], []>} : vector<1x32xf32>, vector<32x32xf32>, vector<1x32xf32> -> vector<1x32xf32>
    %153 = arith.addf %148, %152 : vector<1x32xf32>
    %154 = vector.extract_strided_slice %142 {offsets = [2, 0], sizes = [1, 32], strides = [1, 1]} : vector<4x32xf32> to vector<1x32xf32>
    %c2_159 = arith.constant 2 : index
    %c0_160 = arith.constant 0 : index
    %c0_161 = arith.constant 0 : index
    %155 = vector.load %arg10[%c2_159, %c0_160, %c0_161] : memref<4x32x32xf32, #tpu.memory_space<vmem>>, vector<1x32x32xf32>
    %156 = vector.shape_cast %155 : vector<1x32x32xf32> to vector<32x32xf32>
    %cst_162 = arith.constant dense<0.000000e+00> : vector<1x32xf32>
    %157 = tpu.matmul %154, %156, %cst_162 {dimension_numbers = #tpu.dot_dimension_numbers<[1], [0], [0], [1], [0, 0, 1, 1], [], []>} : vector<1x32xf32>, vector<32x32xf32>, vector<1x32xf32> -> vector<1x32xf32>
    %158 = arith.addf %153, %157 : vector<1x32xf32>
    %159 = vector.extract_strided_slice %142 {offsets = [3, 0], sizes = [1, 32], strides = [1, 1]} : vector<4x32xf32> to vector<1x32xf32>
    %c3_163 = arith.constant 3 : index
    %c0_164 = arith.constant 0 : index
    %c0_165 = arith.constant 0 : index
    %160 = vector.load %arg10[%c3_163, %c0_164, %c0_165] : memref<4x32x32xf32, #tpu.memory_space<vmem>>, vector<1x32x32xf32>
    %161 = vector.shape_cast %160 : vector<1x32x32xf32> to vector<32x32xf32>
    %cst_166 = arith.constant dense<0.000000e+00> : vector<1x32xf32>
    %162 = tpu.matmul %159, %161, %cst_166 {dimension_numbers = #tpu.dot_dimension_numbers<[1], [0], [0], [1], [0, 0, 1, 1], [], []>} : vector<1x32xf32>, vector<32x32xf32>, vector<1x32xf32> -> vector<1x32xf32>
    %163 = arith.addf %158, %162 : vector<1x32xf32>
    %c0_167 = arith.constant 0 : index
    %c0_168 = arith.constant 0 : index
    %164 = vector.load %arg12[%c0_167, %c0_168] : memref<32x64xf32, #tpu.memory_space<vmem>>, vector<32x64xf32>
    %cst_169 = arith.constant dense<0.000000e+00> : vector<1x64xf32>
    %165 = tpu.matmul %163, %164, %cst_169 {dimension_numbers = #tpu.dot_dimension_numbers<[1], [0], [0], [1], [0, 0, 1, 1], [], []>} : vector<1x32xf32>, vector<32x64xf32>, vector<1x64xf32> -> vector<1x64xf32>
    %c0_170 = arith.constant 0 : index
    %c0_171 = arith.constant 0 : index
    %166 = vector.load %arg13[%c0_170, %c0_171] : memref<1x64xf32, #tpu.memory_space<vmem>>, vector<1x64xf32>
    %167 = arith.addf %165, %166 : vector<1x64xf32>
    %cst_172 = arith.constant 0.000000e+00 : f32
    %168 = vector.broadcast %cst_172 : f32 to vector<1x64xf32>
    %169 = arith.maximumf %167, %168 : vector<1x64xf32>
    %c0_173 = arith.constant 0 : index
    %c0_174 = arith.constant 0 : index
    %170 = vector.load %arg14[%c0_173, %c0_174] : memref<64x64xf32, #tpu.memory_space<vmem>>, vector<64x64xf32>
    %cst_175 = arith.constant dense<0.000000e+00> : vector<1x64xf32>
    %171 = tpu.matmul %169, %170, %cst_175 {dimension_numbers = #tpu.dot_dimension_numbers<[1], [0], [0], [1], [0, 0, 1, 1], [], []>} : vector<1x64xf32>, vector<64x64xf32>, vector<1x64xf32> -> vector<1x64xf32>
    %c0_176 = arith.constant 0 : index
    %c0_177 = arith.constant 0 : index
    %172 = vector.load %arg15[%c0_176, %c0_177] : memref<1x64xf32, #tpu.memory_space<vmem>>, vector<1x64xf32>
    %173 = arith.addf %171, %172 : vector<1x64xf32>
    %cst_178 = arith.constant 0.000000e+00 : f32
    %174 = vector.broadcast %cst_178 : f32 to vector<1x64xf32>
    %175 = arith.maximumf %173, %174 : vector<1x64xf32>
    %c0_179 = arith.constant 0 : index
    %c0_180 = arith.constant 0 : index
    %176 = vector.load %arg16[%c0_179, %c0_180] : memref<64x128xf32, #tpu.memory_space<vmem>>, vector<64x128xf32>
    %cst_181 = arith.constant dense<0.000000e+00> : vector<1x128xf32>
    %177 = tpu.matmul %175, %176, %cst_181 {dimension_numbers = #tpu.dot_dimension_numbers<[1], [0], [0], [1], [0, 0, 1, 1], [], []>} : vector<1x64xf32>, vector<64x128xf32>, vector<1x128xf32> -> vector<1x128xf32>
    %c0_182 = arith.constant 0 : index
    %c0_183 = arith.constant 0 : index
    %178 = vector.load %arg17[%c0_182, %c0_183] : memref<1x128xf32, #tpu.memory_space<vmem>>, vector<1x128xf32>
    %179 = arith.addf %177, %178 : vector<1x128xf32>
    %180 = arith.mulf %163, %163 : vector<1x32xf32>
    %cst_184 = arith.constant dense<0.000000e+00> : vector<1xf32>
    %181 = vector.multi_reduction <add>, %180, %cst_184 [1] : vector<1x32xf32> to vector<1xf32>
    %182 = vector.shape_cast %181 : vector<1xf32> to vector<1x1xf32>
    %cst_185 = arith.constant 1.000000e-24 : f32
    %183 = vector.broadcast %cst_185 : f32 to vector<1x1xf32>
    %184 = arith.maximumf %182, %183 : vector<1x1xf32>
    %185 = math.rsqrt %184 : vector<1x1xf32>
    %186 = vector.broadcast %185 : vector<1x1xf32> to vector<1x32xf32>
    %187 = arith.mulf %163, %186 : vector<1x32xf32>
    %c0_186 = arith.constant 0 : index
    %c0_187 = arith.constant 0 : index
    %188 = vector.load %arg18[%c0_186, %c0_187] : memref<32x128xf32, #tpu.memory_space<vmem>>, vector<32x128xf32>
    %cst_188 = arith.constant dense<0.000000e+00> : vector<1x128xf32>
    %189 = tpu.matmul %187, %188, %cst_188 {dimension_numbers = #tpu.dot_dimension_numbers<[1], [0], [0], [1], [0, 0, 1, 1], [], []>} : vector<1x32xf32>, vector<32x128xf32>, vector<1x128xf32> -> vector<1x128xf32>
    %190 = arith.addf %179, %189 : vector<1x128xf32>
    %c0_189 = arith.constant 0 : index
    %c0_190 = arith.constant 0 : index
    %c0_191 = arith.constant 0 : index
    %191 = vector.load %arg19[%c0_189, %c0_190, %c0_191] : memref<1x1x128xf32, #tpu.memory_space<vmem>>, vector<1x1x128xf32>
    %192 = vector.shape_cast %191 : vector<1x1x128xf32> to vector<1x128xf32>
    %193 = vector.shape_cast %190 : vector<1x128xf32> to vector<1x1x128xf32>
    tpu.vector_store %arg19[%c0_189, %c0_190, %c0_191], %193 {strides = array<i32>} : memref<1x1x128xf32, #tpu.memory_space<vmem>>, vector<1x1x128xf32>,
    return
  }
  func.func @transform_0(%arg0: i32) -> (i32, i32, i32) {
    %c0_i32 = arith.constant 0 : i32
    %c0_i32_0 = arith.constant 0 : i32
    %c0_i32_1 = arith.constant 0 : i32
    return %arg0, %c0_i32, %c0_i32_0 : i32, i32, i32
  }
  func.func @transform_1(%arg0: i32) -> (i32, i32) {
    %c0_i32 = arith.constant 0 : i32
    %c0_i32_0 = arith.constant 0 : i32
    %c0_i32_1 = arith.constant 0 : i32
    return %c0_i32, %c0_i32_0 : i32, i32
  }
  func.func @transform_2(%arg0: i32) -> (i32, i32) {
    %c0_i32 = arith.constant 0 : i32
    %c0_i32_0 = arith.constant 0 : i32
    %c0_i32_1 = arith.constant 0 : i32
    return %c0_i32, %c0_i32_0 : i32, i32
  }
  func.func @transform_3(%arg0: i32) -> (i32, i32, i32) {
    %c0_i32 = arith.constant 0 : i32
    %c0_i32_0 = arith.constant 0 : i32
    %c0_i32_1 = arith.constant 0 : i32
    %c0_i32_2 = arith.constant 0 : i32
    return %c0_i32, %c0_i32_0, %c0_i32_1 : i32, i32, i32
  }
  func.func @transform_4(%arg0: i32) -> (i32, i32, i32) {
    %c0_i32 = arith.constant 0 : i32
    %c0_i32_0 = arith.constant 0 : i32
    %c0_i32_1 = arith.constant 0 : i32
    %c0_i32_2 = arith.constant 0 : i32
    return %c0_i32, %c0_i32_0, %c0_i32_1 : i32, i32, i32
  }
  func.func @transform_5(%arg0: i32) -> (i32, i32) {
    %c0_i32 = arith.constant 0 : i32
    %c0_i32_0 = arith.constant 0 : i32
    %c0_i32_1 = arith.constant 0 : i32
    return %c0_i32, %c0_i32_0 : i32, i32
  }
  func.func @transform_6(%arg0: i32) -> (i32, i32, i32) {
    %c0_i32 = arith.constant 0 : i32
    %c0_i32_0 = arith.constant 0 : i32
    %c0_i32_1 = arith.constant 0 : i32
    %c0_i32_2 = arith.constant 0 : i32
    return %c0_i32, %c0_i32_0, %c0_i32_1 : i32, i32, i32
  }
  func.func @transform_7(%arg0: i32) -> (i32, i32, i32) {
    %c0_i32 = arith.constant 0 : i32
    %c0_i32_0 = arith.constant 0 : i32
    %c0_i32_1 = arith.constant 0 : i32
    %c0_i32_2 = arith.constant 0 : i32
    return %c0_i32, %c0_i32_0, %c0_i32_1 : i32, i32, i32
  }
  func.func @transform_8(%arg0: i32) -> (i32, i32) {
    %c0_i32 = arith.constant 0 : i32
    %c0_i32_0 = arith.constant 0 : i32
    %c0_i32_1 = arith.constant 0 : i32
    return %c0_i32, %c0_i32_0 : i32, i32
  }
  func.func @transform_9(%arg0: i32) -> (i32, i32, i32) {
    %c0_i32 = arith.constant 0 : i32
    %c0_i32_0 = arith.constant 0 : i32
    %c0_i32_1 = arith.constant 0 : i32
    %c0_i32_2 = arith.constant 0 : i32
    return %c0_i32, %c0_i32_0, %c0_i32_1 : i32, i32, i32
  }
  func.func @transform_10(%arg0: i32) -> (i32, i32) {
    %c0_i32 = arith.constant 0 : i32
    %c0_i32_0 = arith.constant 0 : i32
    %c0_i32_1 = arith.constant 0 : i32
    return %c0_i32, %c0_i32_0 : i32, i32
  }
  func.func @transform_11(%arg0: i32) -> (i32, i32) {
    %c0_i32 = arith.constant 0 : i32
    %c0_i32_0 = arith.constant 0 : i32
    %c0_i32_1 = arith.constant 0 : i32
    return %c0_i32, %c0_i32_0 : i32, i32
  }
  func.func @transform_12(%arg0: i32) -> (i32, i32) {
    %c0_i32 = arith.constant 0 : i32
    %c0_i32_0 = arith.constant 0 : i32
    %c0_i32_1 = arith.constant 0 : i32
    return %c0_i32, %c0_i32_0 : i32, i32
  }
  func.func @transform_13(%arg0: i32) -> (i32, i32) {
    %c0_i32 = arith.constant 0 : i32
    %c0_i32_0 = arith.constant 0 : i32
    %c0_i32_1 = arith.constant 0 : i32
    return %c0_i32, %c0_i32_0 : i32, i32
  }
  func.func @transform_14(%arg0: i32) -> (i32, i32) {
    %c0_i32 = arith.constant 0 : i32
    %c0_i32_0 = arith.constant 0 : i32
    %c0_i32_1 = arith.constant 0 : i32
    return %c0_i32, %c0_i32_0 : i32, i32
  }
  func.func @transform_15(%arg0: i32) -> (i32, i32) {
    %c0_i32 = arith.constant 0 : i32
    %c0_i32_0 = arith.constant 0 : i32
    %c0_i32_1 = arith.constant 0 : i32
    return %c0_i32, %c0_i32_0 : i32, i32
  }
  func.func @transform_16(%arg0: i32) -> (i32, i32) {
    %c0_i32 = arith.constant 0 : i32
    %c0_i32_0 = arith.constant 0 : i32
    %c0_i32_1 = arith.constant 0 : i32
    return %c0_i32, %c0_i32_0 : i32, i32
  }
  func.func @transform_17(%arg0: i32) -> (i32, i32) {
    %c0_i32 = arith.constant 0 : i32
    %c0_i32_0 = arith.constant 0 : i32
    %c0_i32_1 = arith.constant 0 : i32
    return %c0_i32, %c0_i32_0 : i32, i32
  }
  func.func @transform_18(%arg0: i32) -> (i32, i32, i32) {
    %c0_i32 = arith.constant 0 : i32
    %c0_i32_0 = arith.constant 0 : i32
    %c0_i32_1 = arith.constant 0 : i32
    return %arg0, %c0_i32, %c0_i32_0 : i32, i32, i32
  }
}

</mosaic_0001>

<bundles_post_ra>
// kernel: pcgn_forward.1
= control target key start
LH: loop header
LB: loop body
LE: loop exit
PB: predicated region body
PF: predicated region fallthrough
CT: control target
= control target key end

     0   :  { %s5586_s27 = smov 0   ;;  %s6168_s0 = inlined_call_operand.vmem [shape: f32[2,64,27], index: 0, kind: input, shape index: {}]   ;;  %s6169_s1 = inlined_call_operand.vmem [shape: f32[27,8], index: 1, kind: input, shape index: {}]   ;;  %s6170_s2 = inlined_call_operand.vmem [shape: f32[1,8], index: 2, kind: input, shape index: {}]   ;;  %s6171_s3 = inlined_call_operand.vmem [shape: f32[9,16,64], index: 3, kind: input, shape index: {}]   ;;  %s6172_s4 = inlined_call_operand.vmem [shape: f32[9,8,16], index: 4, kind: input, shape index: {}]   ;;  %s6173_s5 = inlined_call_operand.vmem [shape: f32[1,16], index: 5, kind: input, shape index: {}]   ;;  %s6174_s6 = inlined_call_operand.vmem [shape: f32[9,4,16], index: 6, kind: input, shape index: {}]   ;;  %s6175_s7 = inlined_call_operand.vmem [shape: f32[9,16,32], index: 7, kind: input, shape index: {}]   ;;  %s6176_s8 = inlined_call_operand.vmem [shape: f32[1,32], index: 8, kind: input, shape index: {}]   ;;  %s6177_s9 = inlined_call_operand.vmem [shape: f32[4,32,32], index: 9, kind: input, shape index: {}]   ;;  %s6178_s10 = inlined_call_operand.vmem [shape: f32[1,32], index: 10, kind: input, shape index: {}]   ;;  %s6179_s11 = inlined_call_operand.vmem [shape: f32[32,64], index: 11, kind: input, shape index: {}]   ;;  %s6180_s12 = inlined_call_operand.vmem [shape: f32[1,64], index: 12, kind: input, shape index: {}]   ;;  %s6181_s13 = inlined_call_operand.vmem [shape: f32[64,64], index: 13, kind: input, shape index: {}]   ;;  %s6182_s14 = inlined_call_operand.vmem [shape: f32[1,64], index: 14, kind: input, shape index: {}]   ;;  %s6183_s15 = inlined_call_operand.vmem [shape: f32[64,128], index: 15, kind: input, shape index: {}]   ;;  %s6184_s16 = inlined_call_operand.vmem [shape: f32[1,128], index: 16, kind: input, shape index: {}]   ;;  %s6185_s17 = inlined_call_operand.vmem [shape: f32[32,128], index: 17, kind: input, shape index: {}]   ;;  %s6186_s18 = inlined_call_operand.vmem [shape: f32[2,1,128], index: 18, kind: output, shape index: {}]  }
   0x1   :  { %6188 = sst [smem:[#allocation2_spill]] %s6168_s0 }
   0x2   :  { %6189 = sst [smem:[#allocation3_spill]] %s6169_s1 }
   0x3   :  { %6190 = sst [smem:[#allocation4_spill]] %s6170_s2 }
   0x4 LB: > { %s4330_s28 = sadd.s32 4294967295, %s5485_s27   ;;  %p4334_p0 = scmp.ge.s32.totalorder %s5485_s27, 1  ;;  %s5485_s27 = sphi %s5586_s27, %s28_s27  }
   0x5   : > { %p512_p1 = scmp.lt.s32.totalorder %s5485_s27, 3 }
   0x7   : > { %p513_p2 = pnand %p4334_p0, %p512_p1 }
   0x8   : > { %s6191_s0 = sld [smem:[#allocation3_spill]] (!%p513_p2)  ;;  %vm616_vm0 = vcmask (!%p513_p2), 1042432   ;;  %p564_p3 = scmp.lt.s32.totalorder (!%p513_p2), %s4330_s28, 1  ;;  %vm5487_vm1 = vmmov (!%p513_p2), 1   ;;  %vm591_vm3 = vcmask (!%p513_p2), 220160   ;;  %vm735_vm4 = vcmask (!%p513_p2), 523264  }
   0x9   : > { %516 = sbr.rel (%p513_p2) target bundleno = 2785 (0xae1), region = 92  ;;  %vm5176_vm2 = vmpackc.low (!%p513_p2), %vm616_vm0, %vm5487_vm1  ;;  %s6192_s26 = sld [smem:[#allocation2_spill]] (!%p513_p2)  ;;  %v4349_v14 = vld [vmem:[%s6171_s3 + $0x10] sm:$0xff] (!%p513_p2)  ;;  %v733_v15 = vld [vmem:[%s6171_s3] sm:$0xff] (!%p513_p2)  ;;  %vm904_vm5 = vcmask (!%p513_p2), 64512   ;;  %vm5489_vm6 = vmmov (!%p513_p2), 0  }
   0xa   : > { %4760 = vmatprep.mubr.msk.f32.mxu0 (!%p513_p2), %vm735_vm4, %v4349_v14  ;;  %s6193_s2 = sld [smem:[#allocation4_spill]] (!%p513_p2)  ;;  %v4353_v45 = vld [vmem:[%s6172_s4 + $0x8] sm:$0xff] (!%p513_p2)  ;;  %v4350_v46 = vld [vmem:[%s6171_s3 + $0x18] sm:$0xff] (!%p513_p2)  ;;  %v4358_v48 = vld [vmem:[%s6171_s3 + $0x20] sm:$0xff] (!%p513_p2)  ;;  %vm2262_vm7 = vcmask (!%p513_p2), 130048   ;;  %vm3640_vm8 = vcmask (!%p513_p2), 261120  }
   0xb   : > { %v734_v47 = vld [vmem:[%s6171_s3 + $0x8] sm:$0xff] (!%p513_p2)  ;;  %v4372_v50 = vld [vmem:[%s6171_s3 + $0x40] sm:$0xff] (!%p513_p2)  ;;  %v4362_v59 = vld [vmem:[%s6172_s4 + $0x10] sm:$0xff] (!%p513_p2)  ;;  %vm4197_vm9 = vcmask (!%p513_p2), 253952  }
   0xc   : > { %v4359_v49 = vld [vmem:[%s6171_s3 + $0x28] sm:$0xff] (!%p513_p2)  ;;  %v4386_v52 = vld [vmem:[%s6171_s3 + $0x60] sm:$0xff] (!%p513_p2)  ;;  %v4365_v62 = vld [vmem:[%s6171_s3 + $0x30] sm:$0xff] (!%p513_p2) }
   0xd   : > { %v4373_v51 = vld [vmem:[%s6171_s3 + $0x48] sm:$0xff] (!%p513_p2)  ;;  %v817_v54 = vld [vmem:[%s6172_s4] sm:$0xff] (!%p513_p2)  ;;  %v4369_v63 = vld [vmem:[%s6172_s4 + $0x18] sm:$0xff] (!%p513_p2) }
   0xe   : > { %v580_v0 = vld [vmem:[%s6191_s0] sm:$0xff] (!%p513_p2)  ;;  %v581_v1 = vld [vmem:[%s6191_s0 + $0x8] sm:$0xff] (!%p513_p2)  ;;  %v582_v2 = vld [vmem:[%s6191_s0 + $0x10] sm:$0xff] (!%p513_p2) }
   0xf   : > { %v5171_v3 = vpack.c.bf16 (!%p513_p2), %v581_v1, %v580_v0  ;;  %v583_v4 = vld [vmem:[%s6191_s0 + $0x18] sm:$0x7] (!%p513_p2)  ;;  %v4387_v53 = vld [vmem:[%s6171_s3 + $0x68] sm:$0xff] (!%p513_p2)  ;;  %v4376_v1 = vld [vmem:[%s6172_s4 + $0x20] sm:$0xff] (!%p513_p2) }
  0x10   : > { %v5175_v5 = vpack.c.bf16 %v583_v4, %v582_v2  ;;  %s6195_s28 = smov (!%p564_p3, %s4330_s28), 1  ;;  %v4337_v16 = vld [vmem:[%s6193_s2] ss:$0 sm:$0xff]  ;;  %v4366_v0 = vld [vmem:[%s6171_s3 + $0x38] sm:$0xff]  ;;  %v4393_v4 = vld [vmem:[%s6171_s3 + $0x70] sm:$0xff] }
  0x11   : > { %5172 = vmatprep.subr.bf16.mxu1 %v5171_v3  ;;  %s4473_s23 = sshll.u32 %s6195_s28, 6  ;;  %s571_s19 = scalar_lea.vmem %s6186_s18, %s6195_s28 }
  0x12   : > { %5174 = vmatpush3.bf16.msra.mxu1 %v5171_v3  ;;  %s568_s29 = scalar_lea.vmem %s6192_s26, %s4473_s23 }
  0x13   : > { %5177 = vmatprep.subr.msk.bf16.mxu1 %vm5176_vm2, %v5175_v5  ;;  %v572_v6 = vld [vmem:[%s568_s29] sm:$0xff]  ;;  %v573_v7 = vld [vmem:[%s568_s29 + $0x8] sm:$0xff]  ;;  %v574_v8 = vld [vmem:[%s568_s29 + $0x10] sm:$0xff] }
  0x14   : > { %4713 = vmatprep.mubr.msk.f32.mxu1 %vm591_vm3, %v572_v6  ;;  %v575_v9 = vld [vmem:[%s568_s29 + $0x18] sm:$0xff]  ;;  %v576_v10 = vld [vmem:[%s568_s29 + $0x20] sm:$0xff]  ;;  %v577_v11 = vld [vmem:[%s568_s29 + $0x28] sm:$0xff] }
  0x15   : > { %v578_v12 = vld [vmem:[%s568_s29 + $0x30] sm:$0xff]  ;;  %v579_v13 = vld [vmem:[%s568_s29 + $0x38] sm:$0xff] }
  0x16   : > { %5180 = vmatpush3.bf16.msk.msra.mxu1 %vm5176_vm2, %v5175_v5  ;;  %v4394_v5 = vld [vmem:[%s6171_s3 + $0x78] sm:$0xff] }
  0x19   : > { %4714 = vmatmul.mubr.msk.f32.vlgmr.msra.gmra.mrb[0].mxu1 %vm591_vm3, %v573_v7 }
  0x1a   : > { %4716 = vmatprep.mubr.msk.f32.mxu1 %vm591_vm3, %v574_v8  ;;  %v4379_v8 = vld [vmem:[%s6171_s3 + $0x50] sm:$0xff] }
  0x1d   : > { %4717 = vmatmul.mubr.msk.f32.gmra.mrb[2].mxu1 %vm591_vm3, %v575_v9  ;;  %v4383_v9 = vld [vmem:[%s6172_s4 + $0x28] sm:$0xff] }
  0x1e   : > { %4719 = vmatprep.mubr.msk.f32.mxu1 %vm591_vm3, %v576_v10  ;;  %v4380_v10 = vld [vmem:[%s6171_s3 + $0x58] sm:$0xff] }
  0x21   : > { %4720 = vmatmul.mubr.msk.f32.gmra.mrb[4].mxu1 %vm591_vm3, %v577_v11 }
  0x22   : > { %4722 = vmatprep.mubr.msk.f32.mxu1 %vm591_vm3, %v578_v12 }
  0x25   : > { %4723 = vmatmul.mubr.msk.f32.gmra.mrb[6].mxu1 %vm591_vm3, %v579_v13  ;;  %v4390_v13 = vld [vmem:[%s6172_s4 + $0x30] sm:$0xff] }
  0x26   : > { %4741 = vmatprep.mubr.msk.f32.mxu1 %vm735_vm4, %v733_v15 }
  0xec   : > { %v4715_v17 = vpop.f32.mrb[0].mxu1 }
  0xed   : > { %v692_v18 = vadd.f32 %v4715_v17, %v4337_v16  ;;  %v686_v19 = vpop.f32.mrb[1].mxu1 }
  0xee   : > { %v687_v20 = vadd.f32 %v4337_v16, %v686_v19  ;;  %v4400_v19 = vld [vmem:[%s6171_s3 + $0x80] sm:$0xff] }
  0xef   : > { %v726_v21 = vmax.f32 %v692_v18, 0.0  ;;  %v4397_v18 = vld [vmem:[%s6172_s4 + $0x38] sm:$0xff] }
  0xf0   : > { %v725_v22 = vmax.f32 %v687_v20, 0.0  ;;  %v4718_v23 = vpop.f32.mrb[2].mxu1  ;;  %v4404_v20 = vld [vmem:[%s6172_s4 + $0x40] sm:$0xff] }
  0xf1   : > { %v702_v24 = vadd.f32 %v4718_v23, %v4337_v16  ;;  %v696_v25 = vpop.f32.mrb[3].mxu1 }
  0xf2   : > { %v5631_v26 = vpack.c.bf16 %v726_v21, %v725_v22  ;;  %v697_v27 = vadd.f32 %v4337_v16, %v696_v25  ;;  %v4401_v21 = vld [vmem:[%s6171_s3 + $0x88] sm:$0xff]  ;;  %v5490_v25 = vmov 0.0  }
  0xf3   : > { %v728_v28 = vmax.f32 %v702_v24, 0.0  ;;  %v5488_v24 = vmov 0.0|0.0  }
  0xf4   : > { %v727_v29 = vmax.f32 %v697_v27, 0.0  ;;  %v4721_v30 = vpop.f32.mrb[4].mxu1  ;;  %5182 = vmatprep.subr.bf16.mxu1 %v5631_v26  ;;  %5198 = vmatprep.subr.bf16.mxu0 %v5631_v26 }
  0xf5   : > { %v712_v31 = vadd.f32 %v4721_v30, %v4337_v16  ;;  %v706_v32 = vpop.f32.mrb[5].mxu1  ;;  %5184 = vmatpush3.bf16.msra.mxu1 %v5631_v26  ;;  %5200 = vmatpush3.bf16.msra.mxu0 %v5631_v26 }
  0xf6   : > { %v5637_v33 = vpack.c.bf16 %v728_v28, %v727_v29  ;;  %v707_v34 = vadd.f32 %v4337_v16, %v706_v32 }
  0xf7   : > { %v730_v35 = vmax.f32 %v712_v31, 0.0 }
  0xf8   : > { %v729_v36 = vmax.f32 %v707_v34, 0.0  ;;  %v4724_v37 = vpop.f32.mrb[6].mxu1  ;;  %5186 = vmatprep.subr.bf16.mxu1 %v5637_v33  ;;  %5202 = vmatprep.subr.bf16.mxu0 %v5637_v33  ;;  %v2261_v34 = vld [vmem:[%s6174_s6] sm:$0xf] }
  0xf9   : > { %v722_v38 = vadd.f32 %v4724_v37, %v4337_v16  ;;  %v716_v39 = vpop.f32.mrb[7].mxu1  ;;  %5188 = vmatpush3.bf16.msra.mxu1 %v5637_v33  ;;  %5204 = vmatpush3.bf16.msra.mxu0 %v5637_v33  ;;  %v4420_v37 = vld [vmem:[%s6174_s6 + $0xc] sm:$0xf] }
  0xfa   : > { %v5643_v40 = vpack.c.bf16 %v730_v35, %v729_v36  ;;  %v717_v41 = vadd.f32 %v4337_v16, %v716_v39  ;;  %v4415_v35 = vld [vmem:[%s6174_s6 + $0x8] sm:$0xf]  ;;  %v4409_v36 = vld [vmem:[%s6174_s6 + $0x4] sm:$0xf]  ;;  %v4430_v39 = vld [vmem:[%s6174_s6 + $0x14] sm:$0xf] }
  0xfb   : > { %v732_v42 = vmax.f32 %v722_v38, 0.0  ;;  %v4425_v38 = vld [vmem:[%s6174_s6 + $0x10] sm:$0xf] }
  0xfc   : > { %v731_v43 = vmax.f32 %v717_v41, 0.0  ;;  %5190 = vmatprep.subr.bf16.mxu1 %v5643_v40  ;;  %5206 = vmatprep.subr.bf16.mxu0 %v5643_v40  ;;  %v4440_v41 = vld [vmem:[%s6174_s6 + $0x1c] sm:$0xf] }
  0xfd   : > { %5192 = vmatpush3.bf16.msra.mxu1 %v5643_v40  ;;  %5208 = vmatpush3.bf16.msra.mxu0 %v5643_v40 }
  0xfe   : > { %v5649_v44 = vpack.c.bf16 %v732_v42, %v731_v43  ;;  %v4445_v42 = vld [vmem:[%s6174_s6 + $0x20] sm:$0xf]  ;;  %v4411_v43 = vld [vmem:[%s6175_s7 + $0x10] sm:$0xff] }
 0x100   : > { %5194 = vmatprep.subr.bf16.mxu1 %v5649_v44  ;;  %5210 = vmatprep.subr.bf16.mxu0 %v5649_v44 }
 0x101   : > { %5196 = vmatpush3.bf16.msra.mxu1 %v5649_v44  ;;  %5212 = vmatpush3.bf16.msra.mxu0 %v5649_v44 }
 0x102   : > { %5214 = vmatprep.subr.bf16.mxu0 %v5631_v26  ;;  %4763 = vmatprep.subr.mxu1 %v4353_v45 }
 0x104   : > { %4761 = vmatmul.mubr.msk.f32.vlgmr.msra.gmra.mrb[0].mxu0 %vm735_vm4, %v4350_v46  ;;  %4742 = vmatmul.mubr.msk.f32.vlgmr.msra.gmra.mrb[8].mxu1 %vm735_vm4, %v734_v47  ;;  %v2336_v46 = vld [vmem:[%s6175_s7] sm:$0xff]  ;;  %v2337_v47 = vld [vmem:[%s6175_s7 + $0x8] sm:$0xff] }
 0x105   : > { %5216 = vmatpush3.bf16.msra.mxu0 %v5631_v26  ;;  %4789 = vmatprep.mubr.msk.f32.mxu0 %vm735_vm4, %v4358_v48 }
 0x106   : > { %5218 = vmatprep.subr.bf16.mxu0 %v5637_v33  ;;  %4764 = vmatpush3.msra.mxu1 %v4353_v45 }
 0x107   : > { %4768 = vmatprep.subr.mxu1 %v817_v54 }
 0x109   : > { %5220 = vmatpush3.bf16.msra.mxu0 %v5637_v33 }
 0x10a   : > { %5222 = vmatprep.subr.bf16.mxu0 %v5643_v40 }
 0x10d   : > { %5224 = vmatpush3.bf16.msra.mxu0 %v5643_v40 }
 0x10e   : > { %5226 = vmatprep.subr.bf16.mxu0 %v5649_v44 }
 0x111   : > { %5228 = vmatpush3.bf16.msra.mxu0 %v5649_v44 }
 0x112   : > { %5246 = vmatprep.subr.bf16.mxu0 %v5631_v26 }
 0x114   : > { %4790 = vmatmul.mubr.msk.f32.vlgmr.msra.gmra.mrb[2].mxu0 %vm735_vm4, %v4359_v49 }
 0x115   : > { %5248 = vmatpush3.bf16.msra.mxu0 %v5631_v26  ;;  %4837 = vmatprep.mubr.msk.f32.mxu0 %vm735_vm4, %v4372_v50 }
 0x116   : > { %5250 = vmatprep.subr.bf16.mxu0 %v5637_v33 }
 0x119   : > { %5252 = vmatpush3.bf16.msra.mxu0 %v5637_v33 }
 0x11a   : > { %5254 = vmatprep.subr.bf16.mxu0 %v5643_v40 }
 0x11d   : > { %5256 = vmatpush3.bf16.msra.mxu0 %v5643_v40 }
 0x11e   : > { %5258 = vmatprep.subr.bf16.mxu0 %v5649_v44 }
 0x121   : > { %5260 = vmatpush3.bf16.msra.mxu0 %v5649_v44 }
 0x122   : > { %5278 = vmatprep.subr.bf16.mxu0 %v5631_v26 }
 0x124   : > { %4838 = vmatmul.mubr.msk.f32.vlgmr.msra.gmra.mrb[4].mxu0 %vm735_vm4, %v4373_v51 }
 0x125   : > { %5280 = vmatpush3.bf16.msra.mxu0 %v5631_v26  ;;  %4885 = vmatprep.mubr.msk.f32.mxu0 %vm735_vm4, %v4386_v52  ;;  %v5335_v52 = vpack.c.bf16 %v2337_v47, %v2336_v46 }
 0x126   : > { %5282 = vmatprep.subr.bf16.mxu0 %v5637_v33 }
 0x129   : > { %5284 = vmatpush3.bf16.msra.mxu0 %v5637_v33 }
 0x12a   : > { %5286 = vmatprep.subr.bf16.mxu0 %v5643_v40 }
 0x12d   : > { %5288 = vmatpush3.bf16.msra.mxu0 %v5643_v40 }
 0x12e   : > { %5290 = vmatprep.subr.bf16.mxu0 %v5649_v44 }
 0x131   : > { %5292 = vmatpush3.bf16.msra.mxu0 %v5649_v44 }
 0x132   : > { %5294 = vmatprep.subr.bf16.mxu0 %v5631_v26 }
 0x134   : > { %4886 = vmatmul.mubr.msk.f32.vlgmr.msra.gmra.mrb[6].mxu0 %vm735_vm4, %v4387_v53  ;;  %v4417_v53 = vld [vmem:[%s6175_s7 + $0x20] sm:$0xff] }
 0x135   : > { %5296 = vmatpush3.bf16.msra.mxu0 %v5631_v26  ;;  %4909 = vmatprep.mubr.msk.f32.mxu0 %vm735_vm4, %v4393_v4 }
 0x136   : > { %5298 = vmatprep.subr.bf16.mxu0 %v5637_v33 }
 0x139   : > { %5300 = vmatpush3.bf16.msra.mxu0 %v5637_v33 }
 0x13a   : > { %5302 = vmatprep.subr.bf16.mxu0 %v5643_v40 }
 0x13d   : > { %5304 = vmatpush3.bf16.msra.mxu0 %v5643_v40 }
 0x13e   : > { %5306 = vmatprep.subr.bf16.mxu0 %v5649_v44 }
 0x141   : > { %5308 = vmatpush3.bf16.msra.mxu0 %v5649_v44 }
 0x142   : > { %5325 = vmatprep.subr.bf16.mxu0 %v5488_v24 }
 0x144   : > { %4910 = vmatmul.mubr.msk.f32.vlgmr.msra.gmra.mrb[8].mxu0 %vm735_vm4, %v4394_v5 }
 0x145   : > { %4945 = vmatprep.mubr.msk.f32.mxu0 %vm5489_vm6, %v5490_v25 }
 0x1d7   : > { %v4762_v55 = vpop.f32.mrb[0].mxu0  ;;  %v4743_v56 = vpop.f32.mrb[8].mxu1 }
 0x1d8   : > { %v893_v57 = vpop.f32.mrb[1].mxu0  ;;  %v808_v58 = vpop.f32.mrb[9].mxu1 }
 0x1d9   : > { %4765 = vmatprep.mubr.msk.f32.mxu1 %vm904_vm5, %v893_v57 }
 0x1da   : > { %4766 = vmatmul.mubr.msk.f32.vlgmr.msra.gmra.mrb[10].mxu1 %vm904_vm5, %v4762_v55 }
 0x1db   : > { %4769 = vmatpush3.msra.mxu1 %v817_v54  ;;  %4770 = vmatprep.mubr.msk.f32.mxu1 %vm904_vm5, %v808_v58  ;;  %v4418_v54 = vld [vmem:[%s6175_s7 + $0x28] sm:$0xff] }
 0x1dc   : > { %4792 = vmatprep.subr.mxu1 %v4362_v59 }
 0x1e2   : > { %4771 = vmatmul.mubr.msk.f32.vlgmr.msra.gmra.mrb[10].mxu1 %vm904_vm5, %v4743_v56 }
 0x1e3   : > { %4793 = vmatpush3.msra.mxu1 %v4362_v59  ;;  %v5341_v59 = vpack.c.bf16 %v4418_v54, %v4417_v53 }
 0x1e4   : > { %5230 = vmatprep.subr.bf16.mxu1 %v5631_v26 }
 0x1e7   : > { %v4791_v60 = vpop.f32.mrb[2].mxu0 }
 0x1e8   : > { %v1142_v61 = vpop.f32.mrb[3].mxu0 }
 0x1e9   : > { %4794 = vmatprep.mubr.msk.f32.mxu1 %vm904_vm5, %v1142_v61  ;;  %v4423_v61 = vld [vmem:[%s6175_s7 + $0x38] sm:$0xff] }
 0x1ea   : > { %4795 = vmatmul.mubr.msk.f32.vlgmr.msra.gmra.mrb[10].mxu1 %vm904_vm5, %v4791_v60  ;;  %v4422_v60 = vld [vmem:[%s6175_s7 + $0x30] sm:$0xff] }
 0x1eb   : > { %5232 = vmatpush3.bf16.msra.mxu1 %v5631_v26  ;;  %4813 = vmatprep.mubr.msk.f32.mxu1 %vm735_vm4, %v4365_v62 }
 0x1ec   : > { %5234 = vmatprep.subr.bf16.mxu1 %v5637_v33 }
 0x1ef   : > { %5236 = vmatpush3.bf16.msra.mxu1 %v5637_v33 }
 0x1f0   : > { %5238 = vmatprep.subr.bf16.mxu1 %v5643_v40 }
 0x1f3   : > { %5240 = vmatpush3.bf16.msra.mxu1 %v5643_v40 }
 0x1f4   : > { %5242 = vmatprep.subr.bf16.mxu1 %v5649_v44 }
 0x1f7   : > { %5244 = vmatpush3.bf16.msra.mxu1 %v5649_v44  ;;  %v4839_v2 = vpop.f32.mrb[4].mxu0 }
 0x1f8   : > { %4816 = vmatprep.subr.mxu1 %v4369_v63  ;;  %v1480_v3 = vpop.f32.mrb[5].mxu0 }
 0x1fa   : > { %4814 = vmatmul.mubr.msk.f32.vlgmr.msra.gmra.mrb[12].mxu1 %vm735_vm4, %v4366_v0  ;;  %v5347_v0 = vpack.c.bf16 %v4423_v61, %v4422_v60 }
 0x1fb   : > { %4817 = vmatpush3.msra.mxu1 %v4369_v63 }
 0x1fc   : > { %4840 = vmatprep.subr.mxu1 %v4376_v1 }
 0x207   : > { %v4887_v11 = vpop.f32.mrb[6].mxu0 }
 0x208   : > { %v1818_v12 = vpop.f32.mrb[7].mxu0 }
 0x217   : > { %v4911_v14 = vpop.f32.mrb[8].mxu0 }
 0x218   : > { %v1987_v15 = vpop.f32.mrb[9].mxu0 }
 0x2cd   : > { %v4815_v6 = vpop.f32.mrb[12].mxu1 }
 0x2ce   : > { %v1311_v7 = vpop.f32.mrb[13].mxu1 }
 0x2cf   : > { %4818 = vmatprep.mubr.msk.f32.mxu1 %vm904_vm5, %v1311_v7  ;;  %v4433_v7 = vld [vmem:[%s6175_s7 + $0x58] sm:$0xff] }
 0x2d0   : > { %4819 = vmatmul.mubr.msk.f32.vlgmr.msra.gmra.mrb[10].mxu1 %vm904_vm5, %v4815_v6  ;;  %v4432_v6 = vld [vmem:[%s6175_s7 + $0x50] sm:$0xff] }
 0x2d1   : > { %4841 = vmatpush3.msra.mxu1 %v4376_v1  ;;  %4842 = vmatprep.mubr.msk.f32.mxu1 %vm904_vm5, %v1480_v3  ;;  %v4427_v1 = vld [vmem:[%s6175_s7 + $0x40] sm:$0xff] }
 0x2d2   : > { %5262 = vmatprep.subr.bf16.mxu1 %v5631_v26 }
 0x2d8   : > { %4843 = vmatmul.mubr.msk.f32.vlgmr.msra.gmra.mrb[10].mxu1 %vm904_vm5, %v4839_v2  ;;  %v4428_v2 = vld [vmem:[%s6175_s7 + $0x48] sm:$0xff] }
 0x2d9   : > { %5264 = vmatpush3.bf16.msra.mxu1 %v5631_v26  ;;  %4861 = vmatprep.mubr.msk.f32.mxu1 %vm735_vm4, %v4379_v8  ;;  %v5353_v5 = vpack.c.bf16 %v4428_v2, %v4427_v1 }
 0x2da   : > { %5266 = vmatprep.subr.bf16.mxu1 %v5637_v33 }
 0x2dd   : > { %5268 = vmatpush3.bf16.msra.mxu1 %v5637_v33 }
 0x2de   : > { %5270 = vmatprep.subr.bf16.mxu1 %v5643_v40 }
 0x2e1   : > { %5272 = vmatpush3.bf16.msra.mxu1 %v5643_v40 }
 0x2e2   : > { %5274 = vmatprep.subr.bf16.mxu1 %v5649_v44 }
 0x2e5   : > { %5276 = vmatpush3.bf16.msra.mxu1 %v5649_v44 }
 0x2e6   : > { %4864 = vmatprep.subr.mxu1 %v4383_v9 }
 0x2e8   : > { %4862 = vmatmul.mubr.msk.f32.vlgmr.msra.gmra.mrb[14].mxu1 %vm735_vm4, %v4380_v10  ;;  %v5359_v10 = vpack.c.bf16 %v4433_v7, %v4432_v6  ;;  %v4457_v6 = vld [vmem:[%s6177_s9 + $0x40] sm:$0xff]  ;;  %v4458_v7 = vld [vmem:[%s6177_s9 + $0x48] sm:$0xff] }
 0x2e9   : > { %4865 = vmatpush3.msra.mxu1 %v4383_v9 }
 0x2ea   : > { %4888 = vmatprep.subr.mxu1 %v4390_v13 }
 0x3bb   : > { %v4863_v16 = vpop.f32.mrb[14].mxu1 }
 0x3bc   : > { %v1649_v17 = vpop.f32.mrb[15].mxu1 }
 0x3bd   : > { %4866 = vmatprep.mubr.msk.f32.mxu1 %vm904_vm5, %v1649_v17  ;;  %v4443_v17 = vld [vmem:[%s6175_s7 + $0x78] sm:$0xff] }
 0x3be   : > { %4867 = vmatmul.mubr.msk.f32.vlgmr.msra.gmra.mrb[10].mxu1 %vm904_vm5, %v4863_v16  ;;  %v4442_v16 = vld [vmem:[%s6175_s7 + $0x70] sm:$0xff] }
 0x3bf   : > { %4889 = vmatpush3.msra.mxu1 %v4390_v13  ;;  %4890 = vmatprep.mubr.msk.f32.mxu1 %vm904_vm5, %v1818_v12  ;;  %v4438_v12 = vld [vmem:[%s6175_s7 + $0x68] sm:$0xff] }
 0x3c0   : > { %4912 = vmatprep.subr.mxu1 %v4397_v18 }
 0x3c6   : > { %4891 = vmatmul.mubr.msk.f32.vlgmr.msra.gmra.mrb[10].mxu1 %vm904_vm5, %v4887_v11  ;;  %v4437_v11 = vld [vmem:[%s6175_s7 + $0x60] sm:$0xff] }
 0x3c7   : > { %4913 = vmatpush3.msra.mxu1 %v4397_v18  ;;  %4914 = vmatprep.mubr.msk.f32.mxu1 %vm904_vm5, %v1987_v15  ;;  %v5365_v15 = vpack.c.bf16 %v4438_v12, %v4437_v11  ;;  %v4460_v11 = vld [vmem:[%s6177_s9 + $0x58] sm:$0xff] }
 0x3c8   : > { %5310 = vmatprep.subr.bf16.mxu1 %v5631_v26 }
 0x3ce   : > { %4915 = vmatmul.mubr.msk.f32.vlgmr.msra.gmra.mrb[10].mxu1 %vm904_vm5, %v4911_v14 }
 0x3cf   : > { %5312 = vmatpush3.bf16.msra.mxu1 %v5631_v26  ;;  %4933 = vmatprep.mubr.msk.f32.mxu1 %vm735_vm4, %v4400_v19  ;;  %v4407_v26 = vld [vmem:[%s6173_s5] ss:$0 sm:$0xff] }
 0x3d0   : > { %5314 = vmatprep.subr.bf16.mxu1 %v5637_v33 }
 0x3d3   : > { %5316 = vmatpush3.bf16.msra.mxu1 %v5637_v33 }
 0x3d4   : > { %5318 = vmatprep.subr.bf16.mxu1 %v5643_v40 }
 0x3d7   : > { %5320 = vmatpush3.bf16.msra.mxu1 %v5643_v40  ;;  %v4435_v40 = vld [vmem:[%s6174_s6 + $0x18] sm:$0xf] }
 0x3d8   : > { %5322 = vmatprep.subr.bf16.mxu1 %v5649_v44 }
 0x3db   : > { %5324 = vmatpush3.bf16.msra.mxu1 %v5649_v44  ;;  %v4412_v44 = vld [vmem:[%s6175_s7 + $0x18] sm:$0xff] }
 0x3dc   : > { %4936 = vmatprep.subr.mxu1 %v4404_v20  ;;  %v5332_v45 = vpack.c.bf16 %v4412_v44, %v4411_v43 }
 0x3de   : > { %4934 = vmatmul.mubr.msk.f32.vlgmr.msra.gmra.mrb[16].mxu1 %vm735_vm4, %v4401_v21  ;;  %v4447_v21 = vld [vmem:[%s6175_s7 + $0x80] sm:$0xff] }
 0x3df   : > { %4937 = vmatpush3.msra.mxu1 %v4404_v20  ;;  %v5371_v20 = vpack.c.bf16 %v4443_v17, %v4442_v16  ;;  %v4464_v17 = vld [vmem:[%s6177_s9 + $0x70] sm:$0xff] }
 0x3e0   : > { %5337 = vmatprep.subr.bf16.mxu1 %v5488_v24 }
 0x4b1   : > { %v4935_v22 = vpop.f32.mrb[16].mxu1 }
 0x4b2   : > { %v2156_v23 = vpop.f32.mrb[17].mxu1 }
 0x4b3   : > { %4938 = vmatprep.mubr.msk.f32.mxu1 %vm904_vm5, %v2156_v23 }
 0x4b4   : > { %4939 = vmatmul.mubr.msk.f32.vlgmr.msra.gmra.mrb[10].mxu1 %vm904_vm5, %v4935_v22  ;;  %v4448_v22 = vld [vmem:[%s6175_s7 + $0x88] sm:$0xff] }
 0x4b5   : > { %4973 = vmatprep.mubr.msk.f32.mxu1 %vm5489_vm6, %v5490_v25  ;;  %v5377_v23 = vpack.c.bf16 %v4448_v22, %v4447_v21  ;;  %v3954_v21 = vld [vmem:[%s6179_s11 + $0x10] sm:$0xff]  ;;  %v3955_v22 = vld [vmem:[%s6179_s11 + $0x18] sm:$0xff] }
 0x587   : > { %v4940_v27 = vpop.f32.mrb[10].mxu1 }
 0x588   : > { %v2258_v28 = vadd.f32 %v4940_v27, %v4407_v26  ;;  %v2239_v29 = vpop.f32.mrb[11].mxu1  ;;  %v3637_v27 = vld [vmem:[%s6177_s9 + $0x8] sm:$0xff] }
 0x589   : > { %v2257_v30 = vadd.f32 %v4407_v26, %v2239_v29  ;;  %v3636_v26 = vld [vmem:[%s6177_s9] sm:$0xff]  ;;  %v3638_v29 = vld [vmem:[%s6177_s9 + $0x10] sm:$0xff] }
 0x58a   : > { %v2260_v31 = vmax.f32 %v2258_v28, 0.0  ;;  %v5380_v28 = vpack.c.bf16 %v3637_v27, %v3636_v26  ;;  %v3635_v26 = vld [vmem:[%s6178_s10] sm:$0x1] }
 0x58b   : > { %v2259_v32 = vmax.f32 %v2257_v30, 0.0  ;;  %v3639_v30 = vld [vmem:[%s6177_s9 + $0x18] sm:$0xff] }
 0x58d   : > { %v5326_v33 = vpack.c.bf16 %v2260_v31, %v2259_v32  ;;  %v5383_v31 = vpack.c.bf16 %v3639_v30, %v3638_v29  ;;  %v3952_v32 = vld [vmem:[%s6179_s11] sm:$0xff] }
 0x58f   : > { %5327 = vmatpush3.bf16.msra.mxu0 %v5326_v33  ;;  %5339 = vmatpush3.bf16.msra.mxu1 %v5326_v33 }
 0x590   : > { %5328 = vmatprep.subr.bf16.mxu0 %v5488_v24  ;;  %5343 = vmatprep.subr.bf16.mxu1 %v5488_v24 }
 0x592   : > { %4946 = vmatmul.mubr.msk.f32.vlgmr.msra.gmra.mrb[10].mxu0 %vm2262_vm7, %v2261_v34  ;;  %4974 = vmatmul.mubr.msk.f32.vlgmr.msra.gmra.mrb[18].mxu1 %vm2262_vm7, %v4415_v35 }
 0x593   : > { %5330 = vmatpush3.bf16.msra.mxu0 %v5326_v33  ;;  %5345 = vmatpush3.bf16.msra.mxu1 %v5326_v33 }
 0x594   : > { %4952 = vmatprep.mubr.msk.f32.mxu0 %vm5489_vm6, %v5490_v25  ;;  %4987 = vmatprep.mubr.msk.f32.mxu1 %vm5489_vm6, %v5490_v25 }
 0x595   : > { %5349 = vmatprep.subr.bf16.mxu1 %v5488_v24  ;;  %5331 = vmatprep.subr.bf16.mxu0 %v5488_v24 }
 0x596   : > { %4953 = vmatmul.mubr.msk.f32.vlgmr.msra.gmra.mrb[12].mxu0 %vm2262_vm7, %v4409_v36  ;;  %4988 = vmatmul.mubr.msk.f32.vlgmr.msra.gmra.mrb[20].mxu1 %vm2262_vm7, %v4420_v37 }
 0x597   : > { %5351 = vmatpush3.bf16.msra.mxu1 %v5326_v33  ;;  %5001 = vmatprep.mubr.msk.f32.mxu1 %vm5489_vm6, %v5490_v25 }
 0x598   : > { %5355 = vmatprep.subr.bf16.mxu1 %v5488_v24  ;;  %4959 = vmatprep.mubr.msk.f32.mxu0 %vm5489_vm6, %v5490_v25 }
 0x599   : > { %5333 = vmatpush3.bf16.msra.mxu0 %v5332_v45 }
 0x59a   : > { %5002 = vmatmul.mubr.msk.f32.vlgmr.msra.gmra.mrb[22].mxu1 %vm2262_vm7, %v4425_v38  ;;  %5334 = vmatprep.subr.bf16.mxu0 %v5488_v24 }
 0x59b   : > { %5357 = vmatpush3.bf16.msra.mxu1 %v5326_v33  ;;  %5015 = vmatprep.mubr.msk.f32.mxu1 %vm5489_vm6, %v5490_v25 }
 0x59c   : > { %5361 = vmatprep.subr.bf16.mxu1 %v5488_v24 }
 0x59e   : > { %5016 = vmatmul.mubr.msk.f32.vlgmr.msra.gmra.mrb[24].mxu1 %vm2262_vm7, %v4430_v39 }
 0x59f   : > { %5363 = vmatpush3.bf16.msra.mxu1 %v5326_v33  ;;  %5029 = vmatprep.mubr.msk.f32.mxu1 %vm5489_vm6, %v5490_v25 }
 0x5a0   : > { %5367 = vmatprep.subr.bf16.mxu1 %v5488_v24 }
 0x5a2   : > { %5030 = vmatmul.mubr.msk.f32.vlgmr.msra.gmra.mrb[26].mxu1 %vm2262_vm7, %v4435_v40 }
 0x5a3   : > { %5369 = vmatpush3.bf16.msra.mxu1 %v5326_v33  ;;  %5043 = vmatprep.mubr.msk.f32.mxu1 %vm5489_vm6, %v5490_v25 }
 0x5a4   : > { %5373 = vmatprep.subr.bf16.mxu1 %v5488_v24 }
 0x5a6   : > { %5044 = vmatmul.mubr.msk.f32.vlgmr.msra.gmra.mrb[28].mxu1 %vm2262_vm7, %v4440_v41 }
 0x5a7   : > { %5375 = vmatpush3.bf16.msra.mxu1 %v5326_v33  ;;  %5057 = vmatprep.mubr.msk.f32.mxu1 %vm5489_vm6, %v5490_v25  ;;  %v3953_v33 = vld [vmem:[%s6179_s11 + $0x8] sm:$0xff] }
 0x5a8   : > { %5379 = vmatprep.subr.bf16.mxu1 %v5488_v24  ;;  %v5404_v34 = vpack.c.bf16 %v3953_v33, %v3952_v32  ;;  %v4031_v32 = vld [vmem:[%s6181_s13] sm:$0xff]  ;;  %v4032_v33 = vld [vmem:[%s6181_s13 + $0x8] sm:$0xff] }
 0x5aa   : > { %5058 = vmatmul.mubr.msk.f32.vlgmr.msra.gmra.mrb[30].mxu1 %vm2262_vm7, %v4445_v42 }
 0x5ab   : > { %5075 = vmatprep.mubr.msk.f32.mxu1 %vm5489_vm6, %v5490_v25  ;;  %5381 = vmatpush3.bf16.msra.mxu1 %v5380_v28 }
 0x5ac   : > { %5382 = vmatprep.subr.bf16.mxu1 %v5488_v24 }
 0x5af   : > { %5384 = vmatpush3.bf16.msra.mxu1 %v5383_v31 }
 0x5b0   : > { %5385 = vmatprep.subr.bf16.mxu1 %v5488_v24 }
 0x665   : > { %v2332_v48 = vpop.f32.mrb[10].mxu0  ;;  %v2633_v49 = vpop.f32.mrb[18].mxu1 }
 0x666   : > { %v4947_v50 = vpop.f32.mrb[11].mxu0  ;;  %v4975_v51 = vpop.f32.mrb[19].mxu1 }
 0x669   : > { %v2409_v55 = vpop.f32.mrb[12].mxu0  ;;  %v2785_v56 = vpop.f32.mrb[20].mxu1 }
 0x66a   : > { %v4954_v57 = vpop.f32.mrb[13].mxu0  ;;  %4960 = vmatmul.mubr.msk.f32.vlgmr.msra.gmra.mrb[14].mxu0 %vm2262_vm7, %v2409_v55  ;;  %v4989_v58 = vpop.f32.mrb[21].mxu1 }
 0x66b   : > { %5336 = vmatpush3.bf16.msra.mxu0 %v5335_v52  ;;  %4966 = vmatprep.mubr.msk.f32.mxu0 %vm5489_vm6, %v5490_v25 }
 0x66c   : > { %5340 = vmatprep.subr.bf16.mxu0 %v5488_v24 }
 0x66d   : > { %v2937_v62 = vpop.f32.mrb[22].mxu1 }
 0x66e   : > { %4967 = vmatmul.mubr.msk.f32.vlgmr.msra.gmra.mrb[16].mxu0 %vm2262_vm7, %v2332_v48  ;;  %v5003_v63 = vpop.f32.mrb[23].mxu1 }
 0x66f   : > { %5342 = vmatpush3.bf16.msra.mxu0 %v5341_v59  ;;  %4980 = vmatprep.mubr.msk.f32.mxu0 %vm5489_vm6, %v5490_v25  ;;  %v4450_v59 = vld [vmem:[%s6176_s8] ss:$0 sm:$0xff]  ;;  %v4453_v63 = vld [vmem:[%s6177_s9 + $0x28] sm:$0xff] }
 0x670   : > { %5346 = vmatprep.subr.bf16.mxu0 %v5488_v24 }
 0x671   : > { %v3089_v3 = vpop.f32.mrb[24].mxu1 }
 0x672   : > { %4981 = vmatmul.mubr.msk.f32.vlgmr.msra.gmra.mrb[18].mxu0 %vm2262_vm7, %v2633_v49  ;;  %v5017_v4 = vpop.f32.mrb[25].mxu1 }
 0x673   : > { %5348 = vmatpush3.bf16.msra.mxu0 %v5347_v0  ;;  %4994 = vmatprep.mubr.msk.f32.mxu0 %vm5489_vm6, %v5490_v25  ;;  %v4455_v4 = vld [vmem:[%s6177_s9 + $0x38] sm:$0xff] }
 0x674   : > { %5352 = vmatprep.subr.bf16.mxu0 %v5488_v24 }
 0x675   : > { %v3241_v8 = vpop.f32.mrb[26].mxu1 }
 0x676   : > { %4995 = vmatmul.mubr.msk.f32.vlgmr.msra.gmra.mrb[20].mxu0 %vm2262_vm7, %v2785_v56  ;;  %v5031_v9 = vpop.f32.mrb[27].mxu1 }
 0x677   : > { %5354 = vmatpush3.bf16.msra.mxu0 %v5353_v5  ;;  %5008 = vmatprep.mubr.msk.f32.mxu0 %vm5489_vm6, %v5490_v25 }
 0x678   : > { %5358 = vmatprep.subr.bf16.mxu0 %v5488_v24 }
 0x679   : > { %v3393_v13 = vpop.f32.mrb[28].mxu1 }
 0x67a   : > { %5009 = vmatmul.mubr.msk.f32.vlgmr.msra.gmra.mrb[22].mxu0 %vm2262_vm7, %v2937_v62  ;;  %v5045_v14 = vpop.f32.mrb[29].mxu1  ;;  %v4452_v62 = vld [vmem:[%s6177_s9 + $0x20] sm:$0xff] }
 0x67b   : > { %5360 = vmatpush3.bf16.msra.mxu0 %v5359_v10  ;;  %5022 = vmatprep.mubr.msk.f32.mxu0 %vm5489_vm6, %v5490_v25  ;;  %v5386_v1 = vpack.c.bf16 %v4453_v63, %v4452_v62  ;;  %v4459_v10 = vld [vmem:[%s6177_s9 + $0x50] sm:$0xff]  ;;  %v4463_v14 = vld [vmem:[%s6177_s9 + $0x68] sm:$0xff]  ;;  %v4039_v63 = vld [vmem:[%s6182_s14] sm:$0x1] }
 0x67c   : > { %5364 = vmatprep.subr.bf16.mxu0 %v5488_v24  ;;  %v5395_v12 = vpack.c.bf16 %v4460_v11, %v4459_v10 }
 0x67d   : > { %v3545_v18 = vpop.f32.mrb[30].mxu1 }
 0x67e   : > { %5023 = vmatmul.mubr.msk.f32.vlgmr.msra.gmra.mrb[24].mxu0 %vm2262_vm7, %v3089_v3  ;;  %v5059_v19 = vpop.f32.mrb[31].mxu1  ;;  %v4454_v3 = vld [vmem:[%s6177_s9 + $0x30] sm:$0xff] }
 0x67f   : > { %5366 = vmatpush3.bf16.msra.mxu0 %v5365_v15  ;;  %5036 = vmatprep.mubr.msk.f32.mxu0 %vm5489_vm6, %v5490_v25  ;;  %v5389_v5 = vpack.c.bf16 %v4455_v4, %v4454_v3 }
 0x680   : > { %5370 = vmatprep.subr.bf16.mxu0 %v5488_v24 }
 0x682   : > { %5037 = vmatmul.mubr.msk.f32.vlgmr.msra.gmra.mrb[26].mxu0 %vm2262_vm7, %v3241_v8  ;;  %v5392_v8 = vpack.c.bf16 %v4458_v7, %v4457_v6  ;;  %v4206_v7 = vld [vmem:[%s6185_s17 + $0x10] sm:$0xff] }
 0x683   : > { %5372 = vmatpush3.bf16.msra.mxu0 %v5371_v20  ;;  %5050 = vmatprep.mubr.msk.f32.mxu0 %vm5489_vm6, %v5490_v25 }
 0x684   : > { %5376 = vmatprep.subr.bf16.mxu0 %v5488_v24 }
 0x686   : > { %5051 = vmatmul.mubr.msk.f32.vlgmr.msra.gmra.mrb[28].mxu0 %vm2262_vm7, %v3393_v13  ;;  %v4462_v13 = vld [vmem:[%s6177_s9 + $0x60] sm:$0xff] }
 0x687   : > { %5378 = vmatpush3.bf16.msra.mxu0 %v5377_v23  ;;  %5064 = vmatprep.mubr.msk.f32.mxu0 %vm5489_vm6, %v5490_v25  ;;  %v5398_v15 = vpack.c.bf16 %v4463_v14, %v4462_v13  ;;  %v5407_v23 = vpack.c.bf16 %v3955_v22, %v3954_v21 }
 0x688   : > { %5403 = vmatprep.subr.bf16.mxu0 %v5488_v24 }
 0x68a   : > { %5065 = vmatmul.mubr.msk.f32.vlgmr.msra.gmra.mrb[30].mxu0 %vm2262_vm7, %v3545_v18  ;;  %v4465_v18 = vld [vmem:[%s6177_s9 + $0x78] sm:$0xff] }
 0x68b   : > { %5119 = vmatprep.mubr.msk.f32.mxu0 %vm5489_vm6, %v5490_v25  ;;  %5405 = vmatpush3.bf16.msra.mxu0 %v5404_v34  ;;  %v5401_v19 = vpack.c.bf16 %v4465_v18, %v4464_v17  ;;  %v4033_v34 = vld [vmem:[%s6181_s13 + $0x10] sm:$0xff] }
 0x68c   : > { %5406 = vmatprep.subr.bf16.mxu0 %v5488_v24 }
 0x68f   : > { %5408 = vmatpush3.bf16.msra.mxu0 %v5407_v23 }
 0x690   : > { %5409 = vmatprep.subr.bf16.mxu0 %v5488_v24 }
 0x73d   : > { %v2485_v35 = vpop.f32.mrb[14].mxu0 }
 0x73e   : > { %v4961_v36 = vpop.f32.mrb[15].mxu0 }
 0x73f   : > { %v4034_v36 = vld [vmem:[%s6181_s13 + $0x18] sm:$0xff] }
 0x741   : > { %v2558_v37 = vpop.f32.mrb[16].mxu0 }
 0x742   : > { %v2559_v38 = vadd.f32 %v2558_v37, %v2485_v35  ;;  %v4968_v39 = vpop.f32.mrb[17].mxu0  ;;  %v5410_v35 = vpack.c.bf16 %v4032_v33, %v4031_v32  ;;  %v5413_v37 = vpack.c.bf16 %v4034_v36, %v4033_v34 }
 0x743   : > { %v4036_v39 = vld [vmem:[%s6181_s13 + $0x28] sm:$0xff] }
 0x745   : > { %v2709_v40 = vpop.f32.mrb[18].mxu0 }
 0x746   : > { %v2713_v41 = vadd.f32 %v2709_v40, %v2559_v38  ;;  %v4982_v42 = vpop.f32.mrb[19].mxu0  ;;  %v4035_v38 = vld [vmem:[%s6181_s13 + $0x20] sm:$0xff] }
 0x747   : > { %v5416_v40 = vpack.c.bf16 %v4036_v39, %v4035_v38  ;;  %v4038_v42 = vld [vmem:[%s6181_s13 + $0x38] sm:$0xff] }
 0x749   : > { %v2861_v43 = vpop.f32.mrb[20].mxu0 }
 0x74a   : > { %v2865_v44 = vadd.f32 %v2861_v43, %v2713_v41  ;;  %v4996_v45 = vpop.f32.mrb[21].mxu0  ;;  %v4037_v41 = vld [vmem:[%s6181_s13 + $0x30] sm:$0xff] }
 0x74b   : > { %v5419_v43 = vpack.c.bf16 %v4038_v42, %v4037_v41  ;;  %v4114_v45 = vld [vmem:[%s6183_s15] sm:$0xff] }
 0x74d   : > { %v3013_v46 = vpop.f32.mrb[22].mxu0 }
 0x74e   : > { %v3017_v47 = vadd.f32 %v3013_v46, %v2865_v44  ;;  %v5010_v48 = vpop.f32.mrb[23].mxu0  ;;  %v3956_v44 = vld [vmem:[%s6180_s12] sm:$0x1]  ;;  %v4115_v46 = vld [vmem:[%s6183_s15 + $0x8] sm:$0xff] }
 0x751   : > { %v3165_v49 = vpop.f32.mrb[24].mxu0 }
 0x752   : > { %v3169_v50 = vadd.f32 %v3165_v49, %v3017_v47  ;;  %v5024_v51 = vpop.f32.mrb[25].mxu0 }
 0x755   : > { %v3317_v52 = vpop.f32.mrb[26].mxu0 }
 0x756   : > { %v3321_v53 = vadd.f32 %v3317_v52, %v3169_v50  ;;  %v5038_v54 = vpop.f32.mrb[27].mxu0  ;;  %v5422_v50 = vpack.c.bf16 %v4115_v46, %v4114_v45  ;;  %v4116_v52 = vld [vmem:[%s6183_s15 + $0x10] sm:$0xff] }
 0x759   : > { %v3469_v55 = vpop.f32.mrb[28].mxu0 }
 0x75a   : > { %v3473_v56 = vadd.f32 %v3469_v55, %v3321_v53  ;;  %v5052_v57 = vpop.f32.mrb[29].mxu0  ;;  %v4117_v53 = vld [vmem:[%s6183_s15 + $0x18] sm:$0xff]  ;;  %v4118_v55 = vld [vmem:[%s6183_s15 + $0x20] sm:$0xff] }
 0x75b   : > { %v5425_v54 = vpack.c.bf16 %v4117_v53, %v4116_v52 }
 0x75d   : > { %v3621_v58 = vpop.f32.mrb[30].mxu0 }
 0x75e   : > { %v3625_v60 = vadd.f32 %v3621_v58, %v3473_v56  ;;  %v5066_v61 = vpop.f32.mrb[31].mxu0  ;;  %v4119_v56 = vld [vmem:[%s6183_s15 + $0x28] sm:$0xff]  ;;  %v4120_v58 = vld [vmem:[%s6183_s15 + $0x30] sm:$0xff] }
 0x75f   : > { %v5428_v57 = vpack.c.bf16 %v4119_v56, %v4118_v55 }
 0x760   : > { %v3633_v0 = vadd.f32 %v4450_v59, %v3625_v60  ;;  %v4121_v59 = vld [vmem:[%s6183_s15 + $0x38] sm:$0xff] }
 0x761   : > { %v5431_v60 = vpack.c.bf16 %v4121_v59, %v4120_v58 }
 0x762   : > { %v3634_v2 = vmax.f32 %v3633_v0, 0.0  ;;  %v4204_v0 = vld [vmem:[%s6185_s17] sm:$0xff] }
 0x764   : > { %5076 = vmatmul.mubr.msk.f32.vlgmr.msra.gmra.mrb[32].mxu1 %vm3640_vm8, %v3634_v2  ;;  %v3720_v9 = vrot.slane %v3634_v2, 1  ;;  %v3799_v16 = vrot.slane %v3634_v2, 2  ;;  %v3878_v20 = vrot.slane %v3634_v2, 3 }
 0x765   : > { %5387 = vmatpush3.bf16.msra.mxu1 %v5386_v1  ;;  %5086 = vmatprep.mubr.msk.f32.mxu1 %vm5489_vm6, %v5490_v25  ;;  %v4205_v1 = vld [vmem:[%s6185_s17 + $0x8] sm:$0xff] }
 0x766   : > { %5388 = vmatprep.subr.bf16.mxu1 %v5488_v24 }
 0x769   : > { %5390 = vmatpush3.bf16.msra.mxu1 %v5389_v5  ;;  %v5434_v5 = vpack.c.bf16 %v4205_v1, %v4204_v0 }
 0x76a   : > { %5391 = vmatprep.subr.bf16.mxu1 %v5488_v24 }
 0x76c   : > { %5087 = vmatmul.mubr.msk.f32.vlgmr.msra.gmra.mrb[32].mxu1 %vm3640_vm8, %v3720_v9 }
 0x76d   : > { %5393 = vmatpush3.bf16.msra.mxu1 %v5392_v8  ;;  %5097 = vmatprep.mubr.msk.f32.mxu1 %vm5489_vm6, %v5490_v25  ;;  %v4207_v8 = vld [vmem:[%s6185_s17 + $0x18] sm:$0xff] }
 0x76e   : > { %5394 = vmatprep.subr.bf16.mxu1 %v5488_v24  ;;  %v5437_v9 = vpack.c.bf16 %v4207_v8, %v4206_v7 }
 0x771   : > { %5396 = vmatpush3.bf16.msra.mxu1 %v5395_v12  ;;  %v4122_v12 = vld [vmem:[%s6184_s16] sm:$0x1] }
 0x772   : > { %5397 = vmatprep.subr.bf16.mxu1 %v5488_v24 }
 0x774   : > { %5098 = vmatmul.mubr.msk.f32.vlgmr.msra.gmra.mrb[32].mxu1 %vm3640_vm8, %v3799_v16 }
 0x775   : > { %5399 = vmatpush3.bf16.msra.mxu1 %v5398_v15  ;;  %5108 = vmatprep.mubr.msk.f32.mxu1 %vm5489_vm6, %v5490_v25 }
 0x776   : > { %5400 = vmatprep.subr.bf16.mxu1 %v5488_v24 }
 0x779   : > { %5402 = vmatpush3.bf16.msra.mxu1 %v5401_v19 }
 0x77c   : > { %5109 = vmatmul.mubr.msk.f32.vlgmr.msra.gmra.mrb[32].mxu1 %vm3640_vm8, %v3878_v20 }
 0x84f   : > { %v3947_v27 = vpop.f32.mrb[32].mxu1 }
 0x850   : > { %v6067_v28 = vadd.f32 %v3947_v27, %v3635_v26  ;;  %v5110_v29 = vpop.f32.mrb[33].mxu1 }
 0x852   : > { %5120 = vmatmul.mubr.msk.f32.vlgmr.msra.gmra.mrb[32].mxu0 %vm3640_vm8, %v6067_v28  ;;  %v4196_v30 = vmul.f32 %v6067_v28, %v6067_v28 }
 0x853   : > { %5138 = vmatprep.mubr.msk.f32.mxu0 %vm5489_vm6, %v5490_v25  ;;  %5411 = vmatpush3.bf16.msra.mxu0 %v5410_v35 }
 0x854   : > { %v4198_v31 = vsel %vm4197_vm9, %v4196_v30, 0.0  ;;  %5412 = vmatprep.subr.bf16.mxu0 %v5488_v24 }
 0x855   : > { %4199 = vadd.xlane.f32.xlu0 %v4198_v31 }
 0x857   : > { %5414 = vmatpush3.bf16.msra.mxu0 %v5413_v37 }
 0x858   : > { %5415 = vmatprep.subr.bf16.mxu0 %v5488_v24 }
 0x85b   : > { %5417 = vmatpush3.bf16.msra.mxu0 %v5416_v40 }
 0x85c   : > { %5418 = vmatprep.subr.bf16.mxu0 %v5488_v24 }
 0x85f   : > { %5420 = vmatpush3.bf16.msra.mxu0 %v5419_v43 }
 0x860   : > { %5421 = vmatprep.subr.bf16.mxu0 %v5488_v24 }
 0x8e2   : > { %v4200_v61 = vpop.xlane.xlu0 %4199 }
 0x8e3   : > { %v4201_v62 = vmax.f32 %v4200_v61, 1e-24 }
 0x8e5   : > { %5477 = vrsqrt.f32 %v4201_v62 }
 0x8ef   : > { %v5478_v10 = vpop.eup %5477 }
 0x8f0   : > { %v4203_v11 = vmul.f32 %v5478_v10, %v6067_v28 }
 0x925   : > { %v4026_v47 = vpop.f32.mrb[32].mxu0 }
 0x926   : > { %v4027_v48 = vadd.f32 %v4026_v47, %v3956_v44  ;;  %v5121_v49 = vpop.f32.mrb[33].mxu0 }
 0x928   : > { %v4030_v51 = vmax.f32 %v4027_v48, 0.0 }
 0x92a   : > { %5139 = vmatmul.mubr.msk.f32.vlgmr.msra.gmra.mrb[34].mxu0 %vm735_vm4, %v4030_v51 }
 0x92b   : > { %5423 = vmatpush3.bf16.msra.mxu0 %v5422_v50  ;;  %5157 = vmatprep.mubr.msk.f32.mxu0 %vm5489_vm6, %v5490_v25 }
 0x92c   : > { %5424 = vmatprep.subr.bf16.mxu0 %v5488_v24 }
 0x92f   : > { %5426 = vmatpush3.bf16.msra.mxu0 %v5425_v54 }
 0x930   : > { %5427 = vmatprep.subr.bf16.mxu0 %v5488_v24 }
 0x933   : > { %5429 = vmatpush3.bf16.msra.mxu0 %v5428_v57 }
 0x934   : > { %5430 = vmatprep.subr.bf16.mxu0 %v5488_v24 }
 0x937   : > { %5432 = vmatpush3.bf16.msra.mxu0 %v5431_v60 }
 0x938   : > { %5433 = vmatprep.subr.bf16.mxu0 %v5488_v24 }
 0x9fd   : > { %v4109_v2 = vpop.f32.mrb[34].mxu0 }
 0x9fe   : > { %v4110_v3 = vadd.f32 %v4109_v2, %v4039_v63  ;;  %v5140_v4 = vpop.f32.mrb[35].mxu0 }
 0xa00   : > { %v4113_v6 = vmax.f32 %v4110_v3, 0.0 }
 0xa02   : > { %5158 = vmatmul.mubr.msk.f32.vlgmr.msra.gmra.mrb[36].mxu0 %vm735_vm4, %v4113_v6 }
 0xa03   : > { %5435 = vmatpush3.bf16.msra.mxu0 %v5434_v5  ;;  %5168 = vmatprep.mubr.msk.f32.mxu0 %vm5489_vm6, %v5490_v25 }
 0xa04   : > { %5436 = vmatprep.subr.bf16.mxu0 %v5488_v24 }
 0xa07   : > { %5438 = vmatpush3.bf16.msra.mxu0 %v5437_v9 }
 0xa0a   : > { %5169 = vmatmul.mubr.msk.f32.vlgmr.msra.gmra.mrb[36].mxu0 %vm3640_vm8, %v4203_v11 }
 0xadd   : > { %v4277_v13 = vpop.f32.mrb[36].mxu0 }
 0xade   : > { %v5440_v14 = vadd.f32 %v4277_v13, %v4122_v12  ;;  %v5170_v15 = vpop.f32.mrb[37].mxu0 }
 0xae0   : > { %4282 = vst [vmem:[%s571_s19] sm:$0x1] %v5440_v14 }
 0xae1 PF: > { %s28_s27 = sadd.s32 1, %s5485_s27  }
 0xae2   : > { %p25_p4 = scmp.ge.s32.totalorder %s28_s27, 4  }
 0xae4   :  { %27 = sbr.rel (!%p25_p4) target bundleno = 4 (0x4), region = 157 }

</bundles_post_ra>
